<compile_context>
chip_gen: v7x
topology: tpu7x:2x2x1
jax: 0.10.0
libtpu: 0.0.40
codegen_flags: <defaults>
</compile_context>

<pallas_src>
import functools
import math

import numpy as np

import jax
import jax.numpy as jnp
from jax.experimental import pallas as pl
from jax.experimental.pallas import tpu as pltpu


_DIV_SHIFT = 18  # multiply+shift floor-division for the in-kernel column mask


# ------------------------------- Pallas kernel -------------------------------

def _conv3x3_in_relu_kernel(x_ref, w_ref, o_ref, rhs_ref, *, Wpad, Wo):
    """Fused 3x3 conv (stride 1) + InstanceNorm2d(affine=False) + ReLU, B images.

    x_ref   : (B, Cin, SK)        flat zero-padded slabs, row stride Wpad
    w_ref   : (Cout, 9*Cin)       effective weight, K index = (kh*3+kw)*Cin + cin
    o_ref   : (B, Cout, Ho*Wpad)  lane-dense output (row stride Wpad; junk cols masked)
    rhs_ref : (9*Cin, Ho*Wpad)    VMEM scratch: the 9 tap-shifted slab copies
    """
    B, Cout, L = o_ref.shape
    Cin = x_ref.shape[1]
    Ho = L // Wpad
    inv_cnt = 1.0 / float(Ho * Wo)

    # Valid-column mask built in-kernel (removes the old mask input / DMA stream):
    # column valid iff (col % Wpad) < Wo.  Floor-div as multiply+shift so it lowers
    # to plain VPU integer ops; exactness is asserted at trace time in the wrapper.
    magic = (1 << _DIV_SHIFT) // Wpad + 1
    col = jax.lax.broadcasted_iota(jnp.int32, (1, L), 1)
    row = jnp.right_shift(col * magic, _DIV_SHIFT)
    mask = jnp.broadcast_to((col - row * Wpad < Wo).astype(jnp.float32), (Cout, L))

    w = w_ref[...]                                    # (Cout, 9*Cin), tiny

    for b in range(B):                                # static unroll: images per step
        # Build the K = 9*Cin matmul RHS in VMEM scratch: 9 statically shifted
        # copies of the flat slab (tap (kh, kw) -> shift kh*Wpad + kw).  This
        # replaces the previous 3x HBM-duplicated xstack with ~9 VMEM-local copies
        # (unaligned lane slices -> cheap XLU rotates, hidden under the matmul).
        for kh in range(3):
            for kw in range(3):
                t = kh * 3 + kw
                s = kh * Wpad + kw
                rhs_ref[t * Cin:(t + 1) * Cin, :] = x_ref[b, :, s:s + L]

        # One K = 9*Cin matmul per image (vs 3/9 skinny dots): fewer MXU weight
        # pushes / result pops; the (Cout, L) f32 accumulator is ~9 vregs.
        acc = jnp.dot(w, rhs_ref[...], preferred_element_type=jnp.float32)

        # Masked InstanceNorm2d(affine=False, eps=1e-5) over the Ho*Wo valid
        # columns, then ReLU.  The sampled conv bias is omitted on purpose: a
        # per-channel constant is exactly cancelled by the mean subtraction (the
        # reference check includes the bias to verify the cancellation).
        mean = jnp.sum(acc * mask, axis=1, keepdims=True) * inv_cnt
        cent = (acc - mean) * mask                    # junk columns -> 0 (finite)
        var = jnp.sum(cent * cent, axis=1, keepdims=True) * inv_cnt
        o_ref[b] = jnp.maximum(cent * jax.lax.rsqrt(var + 1e-5), 0.0)


def _run_fused_kernel(slab_flat, weight_oihw, *, Ho, Wo, Wpad):
    """slab_flat: (N, Cin, SK) flat zero-padded conv input (row stride Wpad).

    Returns the fused conv+IN+ReLU output as (N, Cout, Ho, Wo) NCHW.
    """
    N, Cin, SK = slab_flat.shape
    Cout = weight_oihw.shape[0]
    L = Ho * Wpad                       # flat spatial length (lane axis)
    assert SK >= 2 * Wpad + 2 + L       # room for the largest in-kernel tap shift

    # Trace-time exactness check for the in-kernel multiply+shift floor-division.
    magic = (1 << _DIV_SHIFT) // Wpad + 1
    cols = np.arange(L, dtype=np.int64)
    assert (L - 1) * magic < 2 ** 31
    assert np.all((cols * magic) >> _DIV_SHIFT == cols // Wpad)

    # Effective weight: wflat[cout, (kh*3+kw)*Cin + cin] = W[cout, cin, kh, kw].
    w_flat = jnp.transpose(weight_oihw.astype(jnp.float32),
                           (0, 2, 3, 1)).reshape(Cout, 9 * Cin)

    # Grid policy: 2 "parallel" steps whenever N >= 2 (keeps both v7x TensorCores
    # busy); the remaining batch is folded into the block (B images per step ->
    # fewer grid steps and per-step overhead on single-TC v5e/v6e).
    steps = 2 if N >= 2 else 1          # TODO(synk): Ho-split 2-way grid when N == 1
    B = -(-N // steps)
    NB = steps * B
    if NB != N:
        slab_flat = jnp.pad(slab_flat, ((0, NB - N), (0, 0), (0, 0)))

    kernel = functools.partial(_conv3x3_in_relu_kernel, Wpad=Wpad, Wo=Wo)
    out_flat = pl.pallas_call(
        kernel,
        out_shape=jax.ShapeDtypeStruct((NB, Cout, L), jnp.float32),
        grid=(steps,),
        in_specs=[
            pl.BlockSpec((B, Cin, SK), lambda g: (g, 0, 0)),
            pl.BlockSpec((Cout, 9 * Cin), lambda g: (0, 0)),
        ],
        out_specs=pl.BlockSpec((B, Cout, L), lambda g: (g, 0, 0)),
        scratch_shapes=[pltpu.VMEM((9 * Cin, L), jnp.float32)],
        compiler_params=pltpu.CompilerParams(
            dimension_semantics=("parallel",)),
    )(slab_flat.astype(jnp.float32), w_flat)

    # (NB, Cout, Ho*Wpad) -> (N, Cout, Ho, Wo): free reshape + one slice copy.
    # TODO(synk): a fused consumer could take the (Ho, Wpad)-strided layout
    # directly and skip this slice entirely.
    return out_flat.reshape(NB, Cout, Ho, Wpad)[:N, :, :, :Wo]


# ---------------------- KL bookkeeping (module side-effects) ------------------

_LOG_SQRT_2PI = 0.5 * math.log(2.0 * math.pi)


def _normal_log_prob(x, mu, sigma):
    return -jnp.log(sigma) - _LOG_SQRT_2PI - 0.5 * jnp.square((x - mu) / sigma)


def log_gaussian_prob(x, mu, rho):
    return _normal_log_prob(x, mu, jax.nn.softplus(rho))


def log_scale_mixture_gaussian_prob(x, pi=0.5, mu=0.0, sigma1=1.0, sigma2=0.001):
    lp1 = jnp.log(pi) + _normal_log_prob(x, mu, sigma1)
    lp2 = jnp.log(1.0 - pi) + _normal_log_prob(x, mu, sigma2)
    return jnp.logaddexp(lp1, lp2)


# --------------------------- block forward (wrapper) --------------------------

def bayesian_up_conv_block_forward(x_nchw, params, *, up_conv, sample_key):
    """Forward pass of the block. Input/output NCHW float32.

    Returns (out, weight, bias, log_q, log_p); log_q/log_p are None for up_conv=True.
    """
    N, Cin, H, W = x_nchw.shape
    Ho, Wo = 2 * H, 2 * W
    Wpad = Wo + 4                      # Wo + 2 conv halo + 2 extra zeros -> for
                                       # H=W=16: L = 32*36 = 1152 = 9*128 lane-dense

    if not up_conv:
        # --- Upsample(x2, nearest) + BayesianConv2d(3x3, pad=1) + IN + ReLU ---
        wmu, wrho, bmu, brho = params
        kw_key, kb_key = jax.random.split(sample_key)
        weight = wmu + jax.nn.softplus(wrho) * jax.random.normal(
            kw_key, wmu.shape, wmu.dtype)                    # (Cout, Cin, 3, 3)
        bias = bmu + jax.nn.softplus(brho) * jax.random.normal(
            kb_key, bmu.shape, bmu.dtype)                    # (Cout,), cancelled by IN

        # KL bookkeeping on the 296 sampled scalars (plain JAX, not a kernel candidate).
        log_q = (log_gaussian_prob(weight, wmu, wrho).sum()
                 + log_gaussian_prob(bias, bmu, brho).sum())
        log_p = (log_scale_mixture_gaussian_prob(weight).sum()
                 + log_scale_mixture_gaussian_prob(bias).sum())

        # XLA prologue (fuses to one small loop fusion producing the flat slab):
        # nearest 2x upsample + zero pad (1 top/left, 2 bottom, 3 right).
        x_up = jnp.repeat(jnp.repeat(x_nchw, 2, axis=2), 2, axis=3)
        slab = jnp.pad(x_up, ((0, 0), (0, 0), (1, 2), (1, 3)))
        slab_flat = slab.reshape(N, Cin, -1)                  # (N, Cin, (Ho+3)*Wpad)
        out = _run_fused_kernel(slab_flat, weight, Ho=Ho, Wo=Wo, Wpad=Wpad)
        return out, weight, bias, log_q, log_p

    # --- ConvTranspose2d(3x3, stride=2, pad=1, out_pad=1) + IN + ReLU ---
    tweight, tbias = params                                   # (Cin, Cout, 3, 3), (Cout,)
    # Single XLA op: zero-dilate by stride 2 AND pad (1 top/left, 2(+1) bottom/right)
    # via lax.pad's interior padding -> flat slab directly.
    slab = jax.lax.pad(x_nchw, jnp.zeros((), x_nchw.dtype),
                       ((0, 0, 0), (0, 0, 0), (1, 3, 1), (1, 4, 1)))
    slab_flat = slab.reshape(N, Cin, -1)
    # Equivalent forward-conv weight: swap in/out channels, flip spatially -> OIHW.
    w_oihw = jnp.transpose(tweight, (1, 0, 2, 3))[:, :, ::-1, ::-1]
    out = _run_fused_kernel(slab_flat, w_oihw, Ho=Ho, Wo=Wo, Wpad=Wpad)
    return out, tweight, tbias, None, None


# ----------------------- deterministic parameter init -----------------------

def init_bayesian_conv_params(key, ch_in, ch_out):
    """Mirrors BayesianConv2d._reset_parameters (kaiming_uniform a=sqrt(5))."""
    fan_in = ch_in * 3 * 3
    bound = 1.0 / math.sqrt(fan_in)
    k1, k2 = jax.random.split(key)
    weight_mu = jax.random.uniform(k1, (ch_out, ch_in, 3, 3), jnp.float32, -bound, bound)
    weight_rho = jnp.full((ch_out, ch_in, 3, 3), -5.0, jnp.float32)
    bias_mu = jax.random.uniform(k2, (ch_out,), jnp.float32, -bound, bound)
    bias_rho = jnp.full((ch_out,), -5.0, jnp.float32)
    return weight_mu, weight_rho, bias_mu, bias_rho


def init_conv_transpose_params(key, ch_in, ch_out):
    """nn.ConvTranspose2d(ch_in, ch_out, 3): weight (ch_in, ch_out, 3, 3), bias (ch_out,)."""
    fan_in = ch_out * 3 * 3
    bound = 1.0 / math.sqrt(fan_in)
    k1, k2 = jax.random.split(key)
    weight = jax.random.uniform(k1, (ch_in, ch_out, 3, 3), jnp.float32, -bound, bound)
    bias = jax.random.uniform(k2, (ch_out,), jnp.float32, -bound, bound)
    return weight, bias


# ------------------------------ pure-JAX refs -------------------------------

def _instance_norm_relu(y_nchw):
    mean = jnp.mean(y_nchw, axis=(2, 3), keepdims=True)
    var = jnp.mean((y_nchw - mean) ** 2, axis=(2, 3), keepdims=True)
    return jnp.maximum((y_nchw - mean) * jax.lax.rsqrt(var + 1e-5), 0.0)


def ref_bayes_branch(x_nchw, weight, bias):
    x_up = jnp.repeat(jnp.repeat(x_nchw, 2, axis=2), 2, axis=3)
    y = jax.lax.conv_general_dilated(
        x_up, weight, (1, 1), ((1, 1), (1, 1)),
        dimension_numbers=("NCHW", "OIHW", "NCHW"),
        precision=jax.lax.Precision.HIGHEST)
    y = y + bias[None, :, None, None]          # included to verify it cancels in IN
    return _instance_norm_relu(y)


def ref_transposed_branch(x_nchw, tweight, tbias):
    w_conv = jnp.transpose(tweight, (1, 0, 2, 3))[:, :, ::-1, ::-1]   # OIHW, flipped
    y = jax.lax.conv_general_dilated(
        x_nchw, w_conv, (1, 1), ((1, 2), (1, 2)), lhs_dilation=(2, 2),
        dimension_numbers=("NCHW", "OIHW", "NCHW"),
        precision=jax.lax.Precision.HIGHEST)
    y = y + tbias[None, :, None, None]
    return _instance_norm_relu(y)


# ---------------------------------- main -------------------------------------

if __name__ == "__main__":
    key = jax.random.PRNGKey(0)
    k_x, k_p1, k_p2, k_eps = jax.random.split(key, 4)

    # N=4 exercises the per-step image batching (B=2) AND the 2-way parallel grid.
    N, CH_IN, CH_OUT, H, W = 4, 4, 8, 16, 16
    x = jax.random.normal(k_x, (N, CH_IN, H, W), jnp.float32)

    forward = jax.jit(bayesian_up_conv_block_forward, static_argnames=("up_conv",))

    # up_conv=False branch (Upsample + BayesianConv2d + InstanceNorm + ReLU)
    bayes_params = init_bayesian_conv_params(k_p1, CH_IN, CH_OUT)
    out_b, w_b, b_b, log_q, log_p = forward(
        x, bayes_params, up_conv=False, sample_key=k_eps)
    out_b = jax.block_until_ready(out_b)
    assert out_b.shape == (N, CH_OUT, 2 * H, 2 * W)
    assert bool(jnp.isfinite(log_q)) and bool(jnp.isfinite(log_p))
    ref_b = ref_bayes_branch(x, w_b, b_b)
    err_b = float(jnp.max(jnp.abs(out_b - ref_b)))

    # up_conv=True branch (ConvTranspose2d + InstanceNorm + ReLU)
    tconv_params = init_conv_transpose_params(k_p2, CH_IN, CH_OUT)
    out_t, w_t, b_t, _, _ = forward(
        x, tconv_params, up_conv=True, sample_key=k_eps)
    out_t = jax.block_until_ready(out_t)
    assert out_t.shape == (N, CH_OUT, 2 * H, 2 * W)
    ref_t = ref_transposed_branch(x, w_t, b_t)
    err_t = float(jnp.max(jnp.abs(out_t - ref_t)))

    # Tightened vs the previous 1e-2 (per review): observed ~1e-5 with the all-f32
    # MXU path; the margin covers rsqrt / reduction-order / MXU-pass differences.
    TOL = 2e-3
    if err_b > TOL or err_t > TOL:
        raise AssertionError(f"mismatch vs reference: err_bayes={err_b}, err_tconv={err_t}")

    print("KERNEL_OK")
</pallas_src>

<mosaic_0001>
module attributes {stable_mosaic.version = 11 : i64} {
  func.func @_conv3x3_in_relu_kernel(%arg0: i32, %arg1: memref<2x4x1260xf32, #tpu.memory_space<vmem>>, %arg2: memref<8x36xf32, #tpu.memory_space<vmem>>, %arg3: memref<2x8x1152xf32, #tpu.memory_space<vmem>>, %arg4: memref<36x1152xf32, #tpu.memory_space<vmem>>) attributes {dimension_semantics = [#tpu.dimension_semantics<parallel>], iteration_bounds = array<i64: 2>, scalar_prefetch = 0 : i64, scratch_operands = 1 : i64, tpu.core_type = #tpu.core_type<tc>, window_params = [{transform_indices = @transform_0, window_bounds = array<i64: 2, 4, 1260>}, {pipeline_mode = #tpu.pipeline_mode<synchronous>, transform_indices = @transform_1, window_bounds = array<i64: 8, 36>}, {transform_indices = @transform_2, window_bounds = array<i64: 2, 8, 1152>}]} {
    %0 = tpu.iota {dimensions = array<i32: 1>} : vector<1x1152xi32>
    %c7282_i32 = arith.constant 7282 : i32
    %1 = vector.broadcast %c7282_i32 : i32 to vector<1x1152xi32>
    %2 = arith.muli %0, %1 : vector<1x1152xi32>
    %c18_i32 = arith.constant 18 : i32
    %3 = vector.broadcast %c18_i32 : i32 to vector<1x1152xi32>
    %4 = arith.shrsi %2, %3 : vector<1x1152xi32>
    %c36_i32 = arith.constant 36 : i32
    %5 = vector.broadcast %c36_i32 : i32 to vector<1x1152xi32>
    %6 = arith.muli %4, %5 : vector<1x1152xi32>
    %7 = arith.subi %0, %6 : vector<1x1152xi32>
    %c32_i32 = arith.constant 32 : i32
    %8 = vector.broadcast %c32_i32 : i32 to vector<1x1152xi32>
    %9 = arith.cmpi slt, %7, %8 : vector<1x1152xi32>
    %10 = arith.extui %9 : vector<1x1152xi1> to vector<1x1152xi32>
    %11 = arith.sitofp %10 : vector<1x1152xi32> to vector<1x1152xf32>
    %12 = vector.shape_cast %11 : vector<1x1152xf32> to vector<1x1152xf32>
    %13 = vector.broadcast %12 : vector<1x1152xf32> to vector<8x1152xf32>
    %c0 = arith.constant 0 : index
    %c0_0 = arith.constant 0 : index
    %14 = vector.load %arg2[%c0, %c0_0] : memref<8x36xf32, #tpu.memory_space<vmem>>, vector<8x36xf32>
    %c0_1 = arith.constant 0 : index
    %c0_2 = arith.constant 0 : index
    %c0_3 = arith.constant 0 : index
    %15 = vector.load %arg1[%c0_1, %c0_2, %c0_3] : memref<2x4x1260xf32, #tpu.memory_space<vmem>>, vector<1x4x1152xf32>
    %16 = vector.shape_cast %15 : vector<1x4x1152xf32> to vector<4x1152xf32>
    %c0_4 = arith.constant 0 : index
    %c0_5 = arith.constant 0 : index
    %17 = vector.load %arg4[%c0_4, %c0_5] : memref<36x1152xf32, #tpu.memory_space<vmem>>, vector<4x1152xf32>
    tpu.vector_store %arg4[%c0_4, %c0_5], %16 {strides = array<i32>} : memref<36x1152xf32, #tpu.memory_space<vmem>>, vector<4x1152xf32>,
    %c0_6 = arith.constant 0 : index
    %c0_7 = arith.constant 0 : index
    %c1 = arith.constant 1 : index
    %18 = vector.load %arg1[%c0_6, %c0_7, %c1] : memref<2x4x1260xf32, #tpu.memory_space<vmem>>, vector<1x4x1152xf32>
    %19 = vector.shape_cast %18 : vector<1x4x1152xf32> to vector<4x1152xf32>
    %c4 = arith.constant 4 : index
    %c0_8 = arith.constant 0 : index
    %20 = vector.load %arg4[%c4, %c0_8] : memref<36x1152xf32, #tpu.memory_space<vmem>>, vector<4x1152xf32>
    tpu.vector_store %arg4[%c4, %c0_8], %19 {strides = array<i32>} : memref<36x1152xf32, #tpu.memory_space<vmem>>, vector<4x1152xf32>,
    %c0_9 = arith.constant 0 : index
    %c0_10 = arith.constant 0 : index
    %c2 = arith.constant 2 : index
    %21 = vector.load %arg1[%c0_9, %c0_10, %c2] : memref<2x4x1260xf32, #tpu.memory_space<vmem>>, vector<1x4x1152xf32>
    %22 = vector.shape_cast %21 : vector<1x4x1152xf32> to vector<4x1152xf32>
    %c8 = arith.constant 8 : index
    %c0_11 = arith.constant 0 : index
    %23 = vector.load %arg4[%c8, %c0_11] : memref<36x1152xf32, #tpu.memory_space<vmem>>, vector<4x1152xf32>
    tpu.vector_store %arg4[%c8, %c0_11], %22 {strides = array<i32>} : memref<36x1152xf32, #tpu.memory_space<vmem>>, vector<4x1152xf32>,
    %c0_12 = arith.constant 0 : index
    %c0_13 = arith.constant 0 : index
    %c36 = arith.constant 36 : index
    %24 = vector.load %arg1[%c0_12, %c0_13, %c36] : memref<2x4x1260xf32, #tpu.memory_space<vmem>>, vector<1x4x1152xf32>
    %25 = vector.shape_cast %24 : vector<1x4x1152xf32> to vector<4x1152xf32>
    %c12 = arith.constant 12 : index
    %c0_14 = arith.constant 0 : index
    %26 = vector.load %arg4[%c12, %c0_14] : memref<36x1152xf32, #tpu.memory_space<vmem>>, vector<4x1152xf32>
    tpu.vector_store %arg4[%c12, %c0_14], %25 {strides = array<i32>} : memref<36x1152xf32, #tpu.memory_space<vmem>>, vector<4x1152xf32>,
    %c0_15 = arith.constant 0 : index
    %c0_16 = arith.constant 0 : index
    %c37 = arith.constant 37 : index
    %27 = vector.load %arg1[%c0_15, %c0_16, %c37] : memref<2x4x1260xf32, #tpu.memory_space<vmem>>, vector<1x4x1152xf32>
    %28 = vector.shape_cast %27 : vector<1x4x1152xf32> to vector<4x1152xf32>
    %c16 = arith.constant 16 : index
    %c0_17 = arith.constant 0 : index
    %29 = vector.load %arg4[%c16, %c0_17] : memref<36x1152xf32, #tpu.memory_space<vmem>>, vector<4x1152xf32>
    tpu.vector_store %arg4[%c16, %c0_17], %28 {strides = array<i32>} : memref<36x1152xf32, #tpu.memory_space<vmem>>, vector<4x1152xf32>,
    %c0_18 = arith.constant 0 : index
    %c0_19 = arith.constant 0 : index
    %c38 = arith.constant 38 : index
    %30 = vector.load %arg1[%c0_18, %c0_19, %c38] : memref<2x4x1260xf32, #tpu.memory_space<vmem>>, vector<1x4x1152xf32>
    %31 = vector.shape_cast %30 : vector<1x4x1152xf32> to vector<4x1152xf32>
    %c20 = arith.constant 20 : index
    %c0_20 = arith.constant 0 : index
    %32 = vector.load %arg4[%c20, %c0_20] : memref<36x1152xf32, #tpu.memory_space<vmem>>, vector<4x1152xf32>
    tpu.vector_store %arg4[%c20, %c0_20], %31 {strides = array<i32>} : memref<36x1152xf32, #tpu.memory_space<vmem>>, vector<4x1152xf32>,
    %c0_21 = arith.constant 0 : index
    %c0_22 = arith.constant 0 : index
    %c72 = arith.constant 72 : index
    %33 = vector.load %arg1[%c0_21, %c0_22, %c72] : memref<2x4x1260xf32, #tpu.memory_space<vmem>>, vector<1x4x1152xf32>
    %34 = vector.shape_cast %33 : vector<1x4x1152xf32> to vector<4x1152xf32>
    %c24 = arith.constant 24 : index
    %c0_23 = arith.constant 0 : index
    %35 = vector.load %arg4[%c24, %c0_23] : memref<36x1152xf32, #tpu.memory_space<vmem>>, vector<4x1152xf32>
    tpu.vector_store %arg4[%c24, %c0_23], %34 {strides = array<i32>} : memref<36x1152xf32, #tpu.memory_space<vmem>>, vector<4x1152xf32>,
    %c0_24 = arith.constant 0 : index
    %c0_25 = arith.constant 0 : index
    %c73 = arith.constant 73 : index
    %36 = vector.load %arg1[%c0_24, %c0_25, %c73] : memref<2x4x1260xf32, #tpu.memory_space<vmem>>, vector<1x4x1152xf32>
    %37 = vector.shape_cast %36 : vector<1x4x1152xf32> to vector<4x1152xf32>
    %c28 = arith.constant 28 : index
    %c0_26 = arith.constant 0 : index
    %38 = vector.load %arg4[%c28, %c0_26] : memref<36x1152xf32, #tpu.memory_space<vmem>>, vector<4x1152xf32>
    tpu.vector_store %arg4[%c28, %c0_26], %37 {strides = array<i32>} : memref<36x1152xf32, #tpu.memory_space<vmem>>, vector<4x1152xf32>,
    %c0_27 = arith.constant 0 : index
    %c0_28 = arith.constant 0 : index
    %c74 = arith.constant 74 : index
    %39 = vector.load %arg1[%c0_27, %c0_28, %c74] : memref<2x4x1260xf32, #tpu.memory_space<vmem>>, vector<1x4x1152xf32>
    %40 = vector.shape_cast %39 : vector<1x4x1152xf32> to vector<4x1152xf32>
    %c32 = arith.constant 32 : index
    %c0_29 = arith.constant 0 : index
    %41 = vector.load %arg4[%c32, %c0_29] : memref<36x1152xf32, #tpu.memory_space<vmem>>, vector<4x1152xf32>
    tpu.vector_store %arg4[%c32, %c0_29], %40 {strides = array<i32>} : memref<36x1152xf32, #tpu.memory_space<vmem>>, vector<4x1152xf32>,
    %c0_30 = arith.constant 0 : index
    %c0_31 = arith.constant 0 : index
    %42 = vector.load %arg4[%c0_30, %c0_31] : memref<36x1152xf32, #tpu.memory_space<vmem>>, vector<36x1152xf32>
    %cst = arith.constant dense<0.000000e+00> : vector<8x1152xf32>
    %43 = tpu.matmul %14, %42, %cst {dimension_numbers = #tpu.dot_dimension_numbers<[1], [0], [0], [1], [0, 0, 1, 1], [], []>} : vector<8x36xf32>, vector<36x1152xf32>, vector<8x1152xf32> -> vector<8x1152xf32>
    %44 = arith.mulf %43, %13 : vector<8x1152xf32>
    %cst_32 = arith.constant dense<0.000000e+00> : vector<8xf32>
    %45 = vector.multi_reduction <add>, %44, %cst_32 [1] : vector<8x1152xf32> to vector<8xf32>
    %46 = vector.shape_cast %45 : vector<8xf32> to vector<8x1xf32>
    %cst_33 = arith.constant 9.765625E-4 : f32
    %47 = vector.broadcast %cst_33 : f32 to vector<8x1xf32>
    %48 = arith.mulf %46, %47 : vector<8x1xf32>
    %49 = vector.broadcast %48 : vector<8x1xf32> to vector<8x1152xf32>
    %50 = arith.subf %43, %49 : vector<8x1152xf32>
    %51 = arith.mulf %50, %13 : vector<8x1152xf32>
    %52 = arith.mulf %51, %51 : vector<8x1152xf32>
    %cst_34 = arith.constant dense<0.000000e+00> : vector<8xf32>
    %53 = vector.multi_reduction <add>, %52, %cst_34 [1] : vector<8x1152xf32> to vector<8xf32>
    %54 = vector.shape_cast %53 : vector<8xf32> to vector<8x1xf32>
    %cst_35 = arith.constant 9.765625E-4 : f32
    %55 = vector.broadcast %cst_35 : f32 to vector<8x1xf32>
    %56 = arith.mulf %54, %55 : vector<8x1xf32>
    %cst_36 = arith.constant 9.99999974E-6 : f32
    %57 = vector.broadcast %cst_36 : f32 to vector<8x1xf32>
    %58 = arith.addf %56, %57 : vector<8x1xf32>
    %59 = math.rsqrt %58 : vector<8x1xf32>
    %60 = vector.broadcast %59 : vector<8x1xf32> to vector<8x1152xf32>
    %61 = arith.mulf %51, %60 : vector<8x1152xf32>
    %cst_37 = arith.constant 0.000000e+00 : f32
    %62 = vector.broadcast %cst_37 : f32 to vector<8x1152xf32>
    %63 = arith.maximumf %61, %62 : vector<8x1152xf32>
    %c0_38 = arith.constant 0 : index
    %c0_39 = arith.constant 0 : index
    %c0_40 = arith.constant 0 : index
    %64 = vector.load %arg3[%c0_38, %c0_39, %c0_40] : memref<2x8x1152xf32, #tpu.memory_space<vmem>>, vector<1x8x1152xf32>
    %65 = vector.shape_cast %64 : vector<1x8x1152xf32> to vector<8x1152xf32>
    %66 = vector.shape_cast %63 : vector<8x1152xf32> to vector<1x8x1152xf32>
    tpu.vector_store %arg3[%c0_38, %c0_39, %c0_40], %66 {strides = array<i32>} : memref<2x8x1152xf32, #tpu.memory_space<vmem>>, vector<1x8x1152xf32>,
    %c1_41 = arith.constant 1 : index
    %c0_42 = arith.constant 0 : index
    %c0_43 = arith.constant 0 : index
    %67 = vector.load %arg1[%c1_41, %c0_42, %c0_43] : memref<2x4x1260xf32, #tpu.memory_space<vmem>>, vector<1x4x1152xf32>
    %68 = vector.shape_cast %67 : vector<1x4x1152xf32> to vector<4x1152xf32>
    %c0_44 = arith.constant 0 : index
    %c0_45 = arith.constant 0 : index
    %69 = vector.load %arg4[%c0_44, %c0_45] : memref<36x1152xf32, #tpu.memory_space<vmem>>, vector<4x1152xf32>
    tpu.vector_store %arg4[%c0_44, %c0_45], %68 {strides = array<i32>} : memref<36x1152xf32, #tpu.memory_space<vmem>>, vector<4x1152xf32>,
    %c1_46 = arith.constant 1 : index
    %c0_47 = arith.constant 0 : index
    %c1_48 = arith.constant 1 : index
    %70 = vector.load %arg1[%c1_46, %c0_47, %c1_48] : memref<2x4x1260xf32, #tpu.memory_space<vmem>>, vector<1x4x1152xf32>
    %71 = vector.shape_cast %70 : vector<1x4x1152xf32> to vector<4x1152xf32>
    %c4_49 = arith.constant 4 : index
    %c0_50 = arith.constant 0 : index
    %72 = vector.load %arg4[%c4_49, %c0_50] : memref<36x1152xf32, #tpu.memory_space<vmem>>, vector<4x1152xf32>
    tpu.vector_store %arg4[%c4_49, %c0_50], %71 {strides = array<i32>} : memref<36x1152xf32, #tpu.memory_space<vmem>>, vector<4x1152xf32>,
    %c1_51 = arith.constant 1 : index
    %c0_52 = arith.constant 0 : index
    %c2_53 = arith.constant 2 : index
    %73 = vector.load %arg1[%c1_51, %c0_52, %c2_53] : memref<2x4x1260xf32, #tpu.memory_space<vmem>>, vector<1x4x1152xf32>
    %74 = vector.shape_cast %73 : vector<1x4x1152xf32> to vector<4x1152xf32>
    %c8_54 = arith.constant 8 : index
    %c0_55 = arith.constant 0 : index
    %75 = vector.load %arg4[%c8_54, %c0_55] : memref<36x1152xf32, #tpu.memory_space<vmem>>, vector<4x1152xf32>
    tpu.vector_store %arg4[%c8_54, %c0_55], %74 {strides = array<i32>} : memref<36x1152xf32, #tpu.memory_space<vmem>>, vector<4x1152xf32>,
    %c1_56 = arith.constant 1 : index
    %c0_57 = arith.constant 0 : index
    %c36_58 = arith.constant 36 : index
    %76 = vector.load %arg1[%c1_56, %c0_57, %c36_58] : memref<2x4x1260xf32, #tpu.memory_space<vmem>>, vector<1x4x1152xf32>
    %77 = vector.shape_cast %76 : vector<1x4x1152xf32> to vector<4x1152xf32>
    %c12_59 = arith.constant 12 : index
    %c0_60 = arith.constant 0 : index
    %78 = vector.load %arg4[%c12_59, %c0_60] : memref<36x1152xf32, #tpu.memory_space<vmem>>, vector<4x1152xf32>
    tpu.vector_store %arg4[%c12_59, %c0_60], %77 {strides = array<i32>} : memref<36x1152xf32, #tpu.memory_space<vmem>>, vector<4x1152xf32>,
    %c1_61 = arith.constant 1 : index
    %c0_62 = arith.constant 0 : index
    %c37_63 = arith.constant 37 : index
    %79 = vector.load %arg1[%c1_61, %c0_62, %c37_63] : memref<2x4x1260xf32, #tpu.memory_space<vmem>>, vector<1x4x1152xf32>
    %80 = vector.shape_cast %79 : vector<1x4x1152xf32> to vector<4x1152xf32>
    %c16_64 = arith.constant 16 : index
    %c0_65 = arith.constant 0 : index
    %81 = vector.load %arg4[%c16_64, %c0_65] : memref<36x1152xf32, #tpu.memory_space<vmem>>, vector<4x1152xf32>
    tpu.vector_store %arg4[%c16_64, %c0_65], %80 {strides = array<i32>} : memref<36x1152xf32, #tpu.memory_space<vmem>>, vector<4x1152xf32>,
    %c1_66 = arith.constant 1 : index
    %c0_67 = arith.constant 0 : index
    %c38_68 = arith.constant 38 : index
    %82 = vector.load %arg1[%c1_66, %c0_67, %c38_68] : memref<2x4x1260xf32, #tpu.memory_space<vmem>>, vector<1x4x1152xf32>
    %83 = vector.shape_cast %82 : vector<1x4x1152xf32> to vector<4x1152xf32>
    %c20_69 = arith.constant 20 : index
    %c0_70 = arith.constant 0 : index
    %84 = vector.load %arg4[%c20_69, %c0_70] : memref<36x1152xf32, #tpu.memory_space<vmem>>, vector<4x1152xf32>
    tpu.vector_store %arg4[%c20_69, %c0_70], %83 {strides = array<i32>} : memref<36x1152xf32, #tpu.memory_space<vmem>>, vector<4x1152xf32>,
    %c1_71 = arith.constant 1 : index
    %c0_72 = arith.constant 0 : index
    %c72_73 = arith.constant 72 : index
    %85 = vector.load %arg1[%c1_71, %c0_72, %c72_73] : memref<2x4x1260xf32, #tpu.memory_space<vmem>>, vector<1x4x1152xf32>
    %86 = vector.shape_cast %85 : vector<1x4x1152xf32> to vector<4x1152xf32>
    %c24_74 = arith.constant 24 : index
    %c0_75 = arith.constant 0 : index
    %87 = vector.load %arg4[%c24_74, %c0_75] : memref<36x1152xf32, #tpu.memory_space<vmem>>, vector<4x1152xf32>
    tpu.vector_store %arg4[%c24_74, %c0_75], %86 {strides = array<i32>} : memref<36x1152xf32, #tpu.memory_space<vmem>>, vector<4x1152xf32>,
    %c1_76 = arith.constant 1 : index
    %c0_77 = arith.constant 0 : index
    %c73_78 = arith.constant 73 : index
    %88 = vector.load %arg1[%c1_76, %c0_77, %c73_78] : memref<2x4x1260xf32, #tpu.memory_space<vmem>>, vector<1x4x1152xf32>
    %89 = vector.shape_cast %88 : vector<1x4x1152xf32> to vector<4x1152xf32>
    %c28_79 = arith.constant 28 : index
    %c0_80 = arith.constant 0 : index
    %90 = vector.load %arg4[%c28_79, %c0_80] : memref<36x1152xf32, #tpu.memory_space<vmem>>, vector<4x1152xf32>
    tpu.vector_store %arg4[%c28_79, %c0_80], %89 {strides = array<i32>} : memref<36x1152xf32, #tpu.memory_space<vmem>>, vector<4x1152xf32>,
    %c1_81 = arith.constant 1 : index
    %c0_82 = arith.constant 0 : index
    %c74_83 = arith.constant 74 : index
    %91 = vector.load %arg1[%c1_81, %c0_82, %c74_83] : memref<2x4x1260xf32, #tpu.memory_space<vmem>>, vector<1x4x1152xf32>
    %92 = vector.shape_cast %91 : vector<1x4x1152xf32> to vector<4x1152xf32>
    %c32_84 = arith.constant 32 : index
    %c0_85 = arith.constant 0 : index
    %93 = vector.load %arg4[%c32_84, %c0_85] : memref<36x1152xf32, #tpu.memory_space<vmem>>, vector<4x1152xf32>
    tpu.vector_store %arg4[%c32_84, %c0_85], %92 {strides = array<i32>} : memref<36x1152xf32, #tpu.memory_space<vmem>>, vector<4x1152xf32>,
    %c0_86 = arith.constant 0 : index
    %c0_87 = arith.constant 0 : index
    %94 = vector.load %arg4[%c0_86, %c0_87] : memref<36x1152xf32, #tpu.memory_space<vmem>>, vector<36x1152xf32>
    %cst_88 = arith.constant dense<0.000000e+00> : vector<8x1152xf32>
    %95 = tpu.matmul %14, %94, %cst_88 {dimension_numbers = #tpu.dot_dimension_numbers<[1], [0], [0], [1], [0, 0, 1, 1], [], []>} : vector<8x36xf32>, vector<36x1152xf32>, vector<8x1152xf32> -> vector<8x1152xf32>
    %96 = arith.mulf %95, %13 : vector<8x1152xf32>
    %cst_89 = arith.constant dense<0.000000e+00> : vector<8xf32>
    %97 = vector.multi_reduction <add>, %96, %cst_89 [1] : vector<8x1152xf32> to vector<8xf32>
    %98 = vector.shape_cast %97 : vector<8xf32> to vector<8x1xf32>
    %cst_90 = arith.constant 9.765625E-4 : f32
    %99 = vector.broadcast %cst_90 : f32 to vector<8x1xf32>
    %100 = arith.mulf %98, %99 : vector<8x1xf32>
    %101 = vector.broadcast %100 : vector<8x1xf32> to vector<8x1152xf32>
    %102 = arith.subf %95, %101 : vector<8x1152xf32>
    %103 = arith.mulf %102, %13 : vector<8x1152xf32>
    %104 = arith.mulf %103, %103 : vector<8x1152xf32>
    %cst_91 = arith.constant dense<0.000000e+00> : vector<8xf32>
    %105 = vector.multi_reduction <add>, %104, %cst_91 [1] : vector<8x1152xf32> to vector<8xf32>
    %106 = vector.shape_cast %105 : vector<8xf32> to vector<8x1xf32>
    %cst_92 = arith.constant 9.765625E-4 : f32
    %107 = vector.broadcast %cst_92 : f32 to vector<8x1xf32>
    %108 = arith.mulf %106, %107 : vector<8x1xf32>
    %cst_93 = arith.constant 9.99999974E-6 : f32
    %109 = vector.broadcast %cst_93 : f32 to vector<8x1xf32>
    %110 = arith.addf %108, %109 : vector<8x1xf32>
    %111 = math.rsqrt %110 : vector<8x1xf32>
    %112 = vector.broadcast %111 : vector<8x1xf32> to vector<8x1152xf32>
    %113 = arith.mulf %103, %112 : vector<8x1152xf32>
    %cst_94 = arith.constant 0.000000e+00 : f32
    %114 = vector.broadcast %cst_94 : f32 to vector<8x1152xf32>
    %115 = arith.maximumf %113, %114 : vector<8x1152xf32>
    %c1_95 = arith.constant 1 : index
    %c0_96 = arith.constant 0 : index
    %c0_97 = arith.constant 0 : index
    %116 = vector.load %arg3[%c1_95, %c0_96, %c0_97] : memref<2x8x1152xf32, #tpu.memory_space<vmem>>, vector<1x8x1152xf32>
    %117 = vector.shape_cast %116 : vector<1x8x1152xf32> to vector<8x1152xf32>
    %118 = vector.shape_cast %115 : vector<8x1152xf32> to vector<1x8x1152xf32>
    tpu.vector_store %arg3[%c1_95, %c0_96, %c0_97], %118 {strides = array<i32>} : memref<2x8x1152xf32, #tpu.memory_space<vmem>>, vector<1x8x1152xf32>,
    return
  }
  func.func @transform_0(%arg0: i32) -> (i32, i32, i32) {
    %c0_i32 = arith.constant 0 : i32
    %c0_i32_0 = arith.constant 0 : i32
    %c0_i32_1 = arith.constant 0 : i32
    return %arg0, %c0_i32, %c0_i32_0 : i32, i32, i32
  }
  func.func @transform_1(%arg0: i32) -> (i32, i32) {
    %c0_i32 = arith.constant 0 : i32
    %c0_i32_0 = arith.constant 0 : i32
    %c0_i32_1 = arith.constant 0 : i32
    return %c0_i32, %c0_i32_0 : i32, i32
  }
  func.func @transform_2(%arg0: i32) -> (i32, i32, i32) {
    %c0_i32 = arith.constant 0 : i32
    %c0_i32_0 = arith.constant 0 : i32
    %c0_i32_1 = arith.constant 0 : i32
    return %arg0, %c0_i32, %c0_i32_0 : i32, i32, i32
  }
}

</mosaic_0001>

<bundles_post_ra>
// kernel: bayesian_up_conv_block_forward.3
= control target key start
LH: loop header
LB: loop body
LE: loop exit
PB: predicated region body
PF: predicated region fallthrough
CT: control target
= control target key end

     0   :  { %s2665_s9 = smov 0   ;;  %s3700_s0 = inlined_call_operand.vmem [shape: f32[4,4,1260], index: 0, kind: input, shape index: {}]   ;;  %s3701_s1 = inlined_call_operand.vmem [shape: f32[8,36], index: 1, kind: input, shape index: {}]   ;;  %s3702_s2 = inlined_call_operand.vmem [shape: f32[4,8,1152], index: 2, kind: output, shape index: {}]  }
   0x1 LB: > { %s2369_s10 = sadd.s32 4294967295, %s2637_s9   ;;  %p2373_p0 = scmp.ge.s32.totalorder %s2637_s9, 1  ;;  %s2637_s9 = sphi %s2665_s9, %s12_s9  }
   0x2   : > { %p114_p1 = scmp.lt.s32.totalorder %s2637_s9, 3 }
   0x4   : > { %p115_p2 = pnand %p2373_p0, %p114_p1 }
   0x5   : > { %s2374_s11 = sshll.u32 (!%p115_p2), %s2369_s10, 1  ;;  %s2639_s16 = smov (!%p115_p2), 126   ;;  %v2647_v13 = vmov (!%p115_p2), 0.0   ;;  %vm350_vm0 = vcmask (!%p115_p2), 1031168   ;;  %vm413_vm1 = vcmask (!%p115_p2), 752640   ;;  %vm287_vm2 = vcmask (!%p115_p2), 1039360  }
   0x6   : > { %118 = sbr.rel (%p115_p2) target bundleno = 1013 (0x3f5), region = 28  ;;  %p139_p3 = scmp.lt.s32.totalorder (!%p115_p2), %s2374_s11, 3  ;;  %897 = vmatprep.mubr.f32.mxu0 (!%p115_p2), %v2647_v13  ;;  %968 = vmatprep.mubr.f32.mxu1 (!%p115_p2), %v2647_v13  ;;  %vm476_vm3 = vcmask (!%p115_p2), 744448   ;;  %vm539_vm4 = vcmask (!%p115_p2), 736256   ;;  %vm602_vm5 = vcmask (!%p115_p2), 457728   ;;  %vm665_vm6 = vcmask (!%p115_p2), 449536  }
   0x7   : > { %s2640_s17 = smov (!%p115_p2), 127   ;;  %s2641_s18 = smov (!%p115_p2), 92   ;;  %vm728_vm7 = vcmask (!%p115_p2), 441344   ;;  %vm805_vm8 = vcmask (!%p115_p2), 1043456   ;;  %vm801_vm9 = vcmask (!%p115_p2), 293888   ;;  %vm2649_vm10 = vmmov (!%p115_p2), 0  }
   0x8   : > { %s2642_s19 = smov (!%p115_p2), 91   ;;  %s2643_s20 = smov (!%p115_p2), 90  }
   0x9   : > { %s2644_s21 = smov (!%p115_p2), 56   ;;  %s2645_s22 = smov (!%p115_p2), 55  }
   0xa   : > { %s2646_s23 = smov (!%p115_p2), 54  }
   0xd   : > { %s3704_s11 = smov (!%p139_p3, %s2374_s11), 3 }
   0xe   : > { %s2585_s12 = smul.u32 40, %s3704_s11 }
   0xf   : > { %s2586_s28 = smul.u32 72, %s3704_s11 }
  0x10   : > { %s2679_s15 = scalar_lea.vmem %s3700_s0, %s2585_s12 }
  0x11   : > { %v2682_v0 = vld [vmem:[%s2679_s15 + $0x8] sm:$0xff]  ;;  %v2685_v1 = vld [vmem:[%s2679_s15] sm:$0xff]  ;;  %v2688_v2 = vld [vmem:[%s2679_s15 + $0x10] sm:$0xff]  ;;  %s3667_s3 = scalar_lea.vmem %s3702_s2, %s2586_s28 }
  0x12   : > { %334 = vrot.lane.b32.xlu1 %v2682_v0, %s2639_s16  ;;  %v2694_v3 = vcombine.high %v2682_v0, %v2682_v0  ;;  %269 = vrot.lane.b32.xlu0 %v2685_v1, %s2640_s17  ;;  %v325_v4 = vcombine.high %v2685_v1, %v2685_v1  ;;  %v2701_v5 = vld [vmem:[%s2679_s15 + $0x18] sm:$0xff]  ;;  %243 = vst [vmem:[#allocation2] sm:$0xf] %v2685_v1  ;;  %245 = vst [vmem:[#allocation2 + $0x10] sm:$0xf] %v2682_v0  ;;  %v2789_v12 = vld [vmem:[%s2679_s15 + $0x20] sm:$0xff] }
  0x13   : > { %247 = vst [vmem:[#allocation2 + $0x20] sm:$0xf] %v2688_v2  ;;  %v2708_v6 = vcombine.high %v2688_v2, %v2688_v2  ;;  %249 = vst [vmem:[#allocation2 + $0x30] sm:$0xf] %v2701_v5  ;;  %v2713_v7 = vcombine.high %v2701_v5, %v2701_v5  ;;  %v389_v8 = vcombine.low %v2682_v0, %v2682_v0  ;;  %v230_v28 = vld [vmem:[%s2679_s15 + $0x20] sm:$0xf] }
  0x14   : > { %244 = vst [vmem:[#allocation2 + $0x8] sm:$0xf] %v325_v4  ;;  %246 = vst [vmem:[#allocation2 + $0x18] sm:$0xf] %v2694_v3  ;;  %v262_v9 = vcombine.low %v2685_v1, %v2685_v1  ;;  %v264_v10 = vcombine.low %v2688_v2, %v2688_v2  ;;  %v265_v11 = vcombine.low %v2701_v5, %v2701_v5  ;;  %v2845_v29 = vld [vmem:[%s2679_s15 + $0x28] sm:$0xff]  ;;  %v2877_v49 = vld [vmem:[%s2679_s15 + $0x30] sm:$0xff] }
  0x15   : > { %248 = vst [vmem:[#allocation2 + $0x28] sm:$0xf] %v2708_v6  ;;  %250 = vst [vmem:[#allocation2 + $0x38] sm:$0xf] %v2713_v7  ;;  %v266_v14 = vcombine.low %v2789_v12, %v2789_v12  ;;  %v2849_v32 = vcombine.high %v2845_v29, %v2845_v29  ;;  %v2864_v43 = vcombine.high %v2789_v12, %v2789_v12 }
  0x16   : > { %332 = vrot.lane.b32.xlu1 %v325_v4, %s2639_s16  ;;  %395 = vrot.lane.b32.xlu0 %v2685_v1, %s2641_s18  ;;  %251 = vst [vmem:[#allocation2 + $0x40] sm:$0xf] %v230_v28  ;;  %v2888_v54 = vcombine.high %v2877_v49, %v2877_v49  ;;  %v2904_v60 = vcombine.low %v2877_v49, %v2877_v49 }
  0x1a   : > { %397 = vrot.lane.b32.xlu1 %v389_v8, %s2641_s18  ;;  %271 = vrot.lane.b32.xlu0 %v389_v8, %s2640_s17 }
  0x1e   : > { %330 = vrot.lane.b32.xlu1 %v2685_v1, %s2639_s16  ;;  %267 = vrot.lane.b32.xlu0 %v262_v9, %s2640_s17 }
  0x22   : > { %273 = vrot.lane.b32.xlu1 %v2682_v0, %s2640_s17  ;;  %393 = vrot.lane.b32.xlu0 %v262_v9, %s2641_s18 }
  0x26   : > { %336 = vrot.lane.b32.xlu1 %v2694_v3, %s2639_s16  ;;  %275 = vrot.lane.b32.xlu0 %v264_v10, %s2640_s17 }
  0x2a   : > { %399 = vrot.lane.b32.xlu1 %v2682_v0, %s2641_s18  ;;  %338 = vrot.lane.b32.xlu0 %v2688_v2, %s2639_s16 }
  0x2e   : > { %458 = vrot.lane.b32.xlu1 %v325_v4, %s2642_s19  ;;  %401 = vrot.lane.b32.xlu0 %v264_v10, %s2641_s18 }
  0x32   : > { %521 = vrot.lane.b32.xlu1 %v2685_v1, %s2643_s20  ;;  %460 = vrot.lane.b32.xlu0 %v2682_v0, %s2642_s19 }
  0x36   : > { %584 = vrot.lane.b32.xlu1 %v325_v4, %s2644_s21  ;;  %523 = vrot.lane.b32.xlu0 %v389_v8, %s2643_s20 }
  0x3a   : > { %647 = vrot.lane.b32.xlu1 %v2685_v1, %s2645_s22  ;;  %586 = vrot.lane.b32.xlu0 %v2682_v0, %s2644_s21 }
  0x3e   : > { %456 = vrot.lane.b32.xlu1 %v2685_v1, %s2642_s19  ;;  %649 = vrot.lane.b32.xlu0 %v389_v8, %s2645_s22 }
  0x42   : > { %582 = vrot.lane.b32.xlu1 %v2685_v1, %s2644_s21  ;;  %519 = vrot.lane.b32.xlu0 %v262_v9, %s2643_s20 }
  0x46   : > { %462 = vrot.lane.b32.xlu1 %v2694_v3, %s2642_s19  ;;  %645 = vrot.lane.b32.xlu0 %v262_v9, %s2645_s22 }
  0x4a   : > { %525 = vrot.lane.b32.xlu1 %v2682_v0, %s2643_s20  ;;  %464 = vrot.lane.b32.xlu0 %v2688_v2, %s2642_s19 }
  0x4e   : > { %588 = vrot.lane.b32.xlu1 %v2694_v3, %s2644_s21  ;;  %527 = vrot.lane.b32.xlu0 %v264_v10, %s2643_s20 }
  0x52   : > { %651 = vrot.lane.b32.xlu1 %v2682_v0, %s2645_s22  ;;  %590 = vrot.lane.b32.xlu0 %v2688_v2, %s2644_s21 }
  0x56   : > { %277 = vrot.lane.b32.xlu1 %v2688_v2, %s2640_s17  ;;  %653 = vrot.lane.b32.xlu0 %v264_v10, %s2645_s22 }
  0x5a   : > { %340 = vrot.lane.b32.xlu1 %v2708_v6, %s2639_s16  ;;  %279 = vrot.lane.b32.xlu0 %v265_v11, %s2640_s17 }
  0x5e   : > { %403 = vrot.lane.b32.xlu1 %v2688_v2, %s2641_s18  ;;  %342 = vrot.lane.b32.xlu0 %v2701_v5, %s2639_s16 }
  0x62   : > { %710 = vrot.lane.b32.xlu1 %v325_v4, %s2646_s23  ;;  %405 = vrot.lane.b32.xlu0 %v265_v11, %s2641_s18 }
  0x66   : > { %708 = vrot.lane.b32.xlu1 %v2685_v1, %s2646_s23  ;;  %712 = vrot.lane.b32.xlu0 %v2682_v0, %s2646_s23 }
  0x6a   : > { %283 = vrot.lane.b32.xlu1 %v266_v14, %s2640_s17  ;;  %281 = vrot.lane.b32.xlu0 %v2701_v5, %s2640_s17 }
  0x6e   : > { %346 = vrot.lane.b32.xlu1 %v2789_v12, %s2639_s16  ;;  %344 = vrot.lane.b32.xlu0 %v2713_v7, %s2639_s16 }
  0x72   : > { %409 = vrot.lane.b32.xlu1 %v266_v14, %s2641_s18  ;;  %407 = vrot.lane.b32.xlu0 %v2701_v5, %s2641_s18 }
  0x76   : > { %468 = vrot.lane.b32.xlu1 %v2701_v5, %s2642_s19  ;;  %466 = vrot.lane.b32.xlu0 %v2708_v6, %s2642_s19 }
  0x7a   : > { %531 = vrot.lane.b32.xlu1 %v265_v11, %s2643_s20  ;;  %529 = vrot.lane.b32.xlu0 %v2688_v2, %s2643_s20 }
  0x7e   : > { %594 = vrot.lane.b32.xlu1 %v2701_v5, %s2644_s21  ;;  %592 = vrot.lane.b32.xlu0 %v2708_v6, %s2644_s21 }
  0x82   : > { %657 = vrot.lane.b32.xlu1 %v265_v11, %s2645_s22  ;;  %655 = vrot.lane.b32.xlu0 %v2688_v2, %s2645_s22 }
  0x84   : > { %v335_v15 = vpop.permute.xlu1 %334  ;;  %v270_v16 = vpop.permute.xlu0 %269 }
  0x86   : > { %716 = vrot.lane.b32.xlu1 %v2688_v2, %s2646_s23  ;;  %714 = vrot.lane.b32.xlu0 %v2694_v3, %s2646_s23 }
  0x88   : > { %v333_v17 = vpop.permute.xlu1 %332  ;;  %v396_v18 = vpop.permute.xlu0 %395 }
  0x89   : > { %v352_v19 = vsel %vm350_vm0, %v333_v17, %v335_v15 }
  0x8a   : > { %370 = vst [vmem:[#allocation2 + $0x50] sm:$0xf] %v352_v19  ;;  %472 = vrot.lane.b32.xlu1 %v2789_v12, %s2642_s19  ;;  %470 = vrot.lane.b32.xlu0 %v2713_v7, %s2642_s19 }
  0x8c   : > { %v398_v20 = vpop.permute.xlu1 %397  ;;  %v272_v21 = vpop.permute.xlu0 %271 }
  0x8d   : > { %v415_v22 = vsel %vm413_vm1, %v396_v18, %v398_v20  ;;  %v289_v23 = vsel %vm287_vm2, %v270_v16, %v272_v21 }
  0x8e   : > { %433 = vst [vmem:[#allocation2 + $0x50] sm:$0xf0] %v415_v22  ;;  %307 = vst [vmem:[#allocation2 + $0x8] sm:$0xf0] %v289_v23  ;;  %535 = vrot.lane.b32.xlu1 %v266_v14, %s2643_s20  ;;  %533 = vrot.lane.b32.xlu0 %v2701_v5, %s2643_s20 }
  0x90   : > { %v331_v24 = vpop.permute.xlu1 %330  ;;  %v268_v25 = vpop.permute.xlu0 %267 }
  0x91   : > { %v351_v26 = vsel %vm350_vm0, %v331_v24, %v333_v17  ;;  %v288_v27 = vsel %vm287_vm2, %v268_v25, %v270_v16  ;;  %v2926_v17 = vcombine.low %v2845_v29, %v2845_v29 }
  0x92   : > { %369 = vst [vmem:[#allocation2 + $0x48] sm:$0xf] %v351_v26  ;;  %306 = vst [vmem:[#allocation2] sm:$0xf0] %v288_v27  ;;  %598 = vrot.lane.b32.xlu1 %v2789_v12, %s2644_s21  ;;  %596 = vrot.lane.b32.xlu0 %v2713_v7, %s2644_s21 }
  0x94   : > { %v274_v30 = vpop.permute.xlu1 %273  ;;  %v394_v31 = vpop.permute.xlu0 %393 }
  0x95   : > { %v290_v33 = vsel %vm287_vm2, %v272_v21, %v274_v30  ;;  %v414_v34 = vsel %vm413_vm1, %v394_v31, %v396_v18  ;;  %v757_v35 = vld [vmem:[#allocation2 + $0x8] sm:$0xff]  ;;  %v766_v36 = vld [vmem:[#allocation2 + $0x50] sm:$0xff] }
  0x96   : > { %308 = vst [vmem:[#allocation2 + $0x10] sm:$0xf0] %v290_v33  ;;  %432 = vst [vmem:[#allocation2 + $0x48] sm:$0xf0] %v414_v34  ;;  %661 = vrot.lane.b32.xlu1 %v266_v14, %s2645_s22  ;;  %659 = vrot.lane.b32.xlu0 %v2701_v5, %s2645_s22  ;;  %v2509_v37 = vpack.c.bf16 %v766_v36, %v757_v35 }
  0x97   : > { %1293 = vst [vmem:[#allocation2 + $0x8] sm:$0xf] %v2849_v32 }
  0x98   : > { %v337_v38 = vpop.permute.xlu1 %336  ;;  %v2857_v39 = vpop.permute.xlu0 %275  ;;  %2510 = vmatprep.subr.bf16.mxu0 %v2509_v37 }
  0x99   : > { %v353_v40 = vsel %vm350_vm0, %v335_v15, %v337_v38  ;;  %v291_v41 = vsel %vm287_vm2, %v274_v30, %v2857_v39  ;;  %v756_v42 = vld [vmem:[#allocation2] sm:$0xff] }
  0x9a   : > { %371 = vst [vmem:[#allocation2 + $0x58] sm:$0xf] %v353_v40  ;;  %309 = vst [vmem:[#allocation2 + $0x18] sm:$0xf0] %v291_v41  ;;  %720 = vrot.lane.b32.xlu1 %v2701_v5, %s2646_s23  ;;  %718 = vrot.lane.b32.xlu0 %v2708_v6, %s2646_s23 }
  0x9b   : > { %1292 = vst [vmem:[#allocation2] sm:$0xf] %v2845_v29 }
  0x9c   : > { %v400_v44 = vpop.permute.xlu1 %399  ;;  %v2871_v45 = vpop.permute.xlu0 %338 }
  0x9d   : > { %v416_v46 = vsel %vm413_vm1, %v398_v20, %v400_v44  ;;  %v354_v47 = vsel %vm350_vm0, %v337_v38, %v2871_v45  ;;  %v765_v48 = vld [vmem:[#allocation2 + $0x48] sm:$0xff]  ;;  %v758_v50 = vld [vmem:[#allocation2 + $0x10] sm:$0xff] }
  0x9e   : > { %434 = vst [vmem:[#allocation2 + $0x58] sm:$0xf0] %v416_v46  ;;  %372 = vst [vmem:[#allocation2 + $0x60] sm:$0xf] %v354_v47  ;;  %348 = vrot.lane.b32.xlu1 %v2864_v43, %s2639_s16  ;;  %285 = vrot.lane.b32.xlu0 %v2789_v12, %s2640_s17  ;;  %v2511_v51 = vpack.c.bf16 %v765_v48, %v756_v42 }
  0x9f   : > { %1294 = vst [vmem:[#allocation2 + $0x10] sm:$0xf] %v2877_v49 }
  0xa0   : > { %v459_v52 = vpop.permute.xlu1 %458  ;;  %v2884_v53 = vpop.permute.xlu0 %401  ;;  %2512 = vmatpush1.bf16.msra.mxu0 %v2511_v51 }
  0xa1   : > { %v417_v55 = vsel %vm413_vm1, %v400_v44, %v2884_v53  ;;  %v759_v56 = vld [vmem:[#allocation2 + $0x18] sm:$0xff] }
  0xa2   : > { %435 = vst [vmem:[#allocation2 + $0x60] sm:$0xf0] %v417_v55  ;;  %722 = vrot.lane.b32.xlu1 %v2713_v7, %s2646_s23  ;;  %411 = vrot.lane.b32.xlu0 %v2789_v12, %s2641_s18  ;;  %1295 = vst [vmem:[#allocation2 + $0x18] sm:$0xf] %v2888_v54 }
  0xa4   : > { %v522_v57 = vpop.permute.xlu1 %521  ;;  %v461_v58 = vpop.permute.xlu0 %460 }
  0xa5   : > { %v478_v59 = vsel %vm476_vm3, %v459_v52, %v461_v58  ;;  %v767_v63 = vld [vmem:[#allocation2 + $0x58] sm:$0xff] }
  0xa6   : > { %496 = vst [vmem:[#allocation2 + $0x98] sm:$0xf] %v478_v59  ;;  %1318 = vrot.lane.b32.xlu1 %v2845_v29, %s2640_s17  ;;  %724 = vrot.lane.b32.xlu0 %v2789_v12, %s2646_s23  ;;  %v2519_v3 = vpack.c.bf16 %v767_v63, %v758_v50 }
  0xa8   : > { %v585_v61 = vpop.permute.xlu1 %584  ;;  %v524_v62 = vpop.permute.xlu0 %523 }
  0xa9   : > { %v541_v0 = vsel %vm539_vm4, %v522_v57, %v524_v62  ;;  %v768_v1 = vld [vmem:[#allocation2 + $0x60] sm:$0xff] }
  0xaa   : > { %559 = vst [vmem:[#allocation2 + $0x98] sm:$0xf0] %v541_v0  ;;  %1380 = vrot.lane.b32.xlu1 %v2849_v32, %s2639_s16  ;;  %1320 = vrot.lane.b32.xlu0 %v2904_v60, %s2640_s17  ;;  %v2517_v2 = vpack.c.bf16 %v768_v1, %v759_v56 }
  0xac   : > { %v648_v4 = vpop.permute.xlu1 %647  ;;  %v587_v5 = vpop.permute.xlu0 %586  ;;  %2518 = vmatprep.subr.bf16.mxu1 %v2517_v2 }
  0xad   : > { %v604_v6 = vsel %vm602_vm5, %v585_v61, %v587_v5  ;;  %2520 = vmatpush1.bf16.msra.mxu1 %v2519_v3 }
  0xae   : > { %622 = vst [vmem:[#allocation2 + $0xe0] sm:$0xf] %v604_v6  ;;  %1442 = vrot.lane.b32.xlu1 %v2845_v29, %s2641_s18  ;;  %1382 = vrot.lane.b32.xlu0 %v2877_v49, %s2639_s16 }
  0xb0   : > { %v457_v7 = vpop.permute.xlu1 %456  ;;  %v650_v8 = vpop.permute.xlu0 %649 }
  0xb1   : > { %v477_v9 = vsel %vm476_vm3, %v457_v7, %v459_v52  ;;  %v667_v10 = vsel %vm665_vm6, %v648_v4, %v650_v8  ;;  %v775_v22 = vld [vmem:[#allocation2 + $0x98] sm:$0xff] }
  0xb2   : > { %495 = vst [vmem:[#allocation2 + $0x90] sm:$0xf] %v477_v9  ;;  %685 = vst [vmem:[#allocation2 + $0xe0] sm:$0xf0] %v667_v10  ;;  %474 = vrot.lane.b32.xlu1 %v2864_v43, %s2642_s19  ;;  %1444 = vrot.lane.b32.xlu0 %v2904_v60, %s2641_s18 }
  0xb4   : > { %v583_v11 = vpop.permute.xlu1 %582  ;;  %v520_v14 = vpop.permute.xlu0 %519 }
  0xb5   : > { %v603_v15 = vsel %vm602_vm5, %v583_v11, %v585_v61  ;;  %v540_v16 = vsel %vm539_vm4, %v520_v14, %v522_v57  ;;  %v2983_v57 = vld [vmem:[%s2679_s15 + $0x38] sm:$0xff] }
  0xb6   : > { %621 = vst [vmem:[#allocation2 + $0xd8] sm:$0xf] %v603_v15  ;;  %558 = vst [vmem:[#allocation2 + $0x90] sm:$0xf0] %v540_v16  ;;  %600 = vrot.lane.b32.xlu1 %v2864_v43, %s2644_s21  ;;  %537 = vrot.lane.b32.xlu0 %v2789_v12, %s2643_s20  ;;  %v2997_v2 = vcombine.high %v2983_v57, %v2983_v57 }
  0xb8   : > { %v463_v18 = vpop.permute.xlu1 %462  ;;  %v646_v19 = vpop.permute.xlu0 %645 }
  0xb9   : > { %v479_v20 = vsel %vm476_vm3, %v461_v58, %v463_v18  ;;  %v666_v21 = vsel %vm665_vm6, %v646_v19, %v648_v4  ;;  %v784_v23 = vld [vmem:[#allocation2 + $0xe0] sm:$0xff] }
  0xba   : > { %497 = vst [vmem:[#allocation2 + $0xa0] sm:$0xf] %v479_v20  ;;  %684 = vst [vmem:[#allocation2 + $0xd8] sm:$0xf0] %v666_v21  ;;  %1316 = vrot.lane.b32.xlu1 %v2926_v17, %s2640_s17  ;;  %663 = vrot.lane.b32.xlu0 %v2789_v12, %s2645_s22  ;;  %v2513_v24 = vpack.c.bf16 %v784_v23, %v775_v22 }
  0xbc   : > { %v526_v25 = vpop.permute.xlu1 %525  ;;  %v2938_v26 = vpop.permute.xlu0 %464  ;;  %2514 = vmatprep.subr.bf16.mxu0 %v2513_v24  ;;  %v3039_v24 = vld [vmem:[%s3701_s1] sm:$0xff] }
  0xbd   : > { %v542_v27 = vsel %vm539_vm4, %v524_v62, %v526_v25  ;;  %v480_v28 = vsel %vm476_vm3, %v463_v18, %v2938_v26  ;;  %v774_v34 = vld [vmem:[#allocation2 + $0x90] sm:$0xff] }
  0xbe   : > { %560 = vst [vmem:[#allocation2 + $0xa0] sm:$0xf0] %v542_v27  ;;  %498 = vst [vmem:[#allocation2 + $0xa8] sm:$0xf] %v480_v28  ;;  %1440 = vrot.lane.b32.xlu1 %v2926_v17, %s2641_s18  ;;  %1378 = vrot.lane.b32.xlu0 %v2845_v29, %s2639_s16  ;;  %v3043_v27 = vld [vmem:[%s2679_s15 + $0x40] sm:$0xff] }
  0xc0   : > { %v589_v30 = vpop.permute.xlu1 %588  ;;  %v2947_v12 = vpop.permute.xlu0 %527 }
  0xc1   : > { %v605_v31 = vsel %vm602_vm5, %v587_v5, %v589_v30  ;;  %v543_v33 = vsel %vm539_vm4, %v526_v25, %v2947_v12  ;;  %v783_v35 = vld [vmem:[#allocation2 + $0xd8] sm:$0xff]  ;;  %v3006_v5 = vcombine.low %v2983_v57, %v2983_v57 }
  0xc2   : > { %623 = vst [vmem:[#allocation2 + $0xe8] sm:$0xf] %v605_v31  ;;  %561 = vst [vmem:[#allocation2 + $0xa8] sm:$0xf0] %v543_v33  ;;  %1506 = vrot.lane.b32.xlu1 %v2877_v49, %s2642_s19  ;;  %1504 = vrot.lane.b32.xlu0 %v2849_v32, %s2642_s19  ;;  %v2515_v36 = vpack.c.bf16 %v783_v35, %v774_v34  ;;  %v3051_v33 = vcombine.high %v3043_v27, %v3043_v27 }
  0xc4   : > { %v652_v37 = vpop.permute.xlu1 %651  ;;  %v2956_v38 = vpop.permute.xlu0 %590  ;;  %2516 = vmatpush1.bf16.msra.mxu0 %v2515_v36 }
  0xc5   : > { %v668_v40 = vsel %vm665_vm6, %v650_v8, %v652_v37  ;;  %v606_v41 = vsel %vm602_vm5, %v589_v30, %v2956_v38  ;;  %v776_v63 = vld [vmem:[#allocation2 + $0xa0] sm:$0xff] }
  0xc6   : > { %686 = vst [vmem:[#allocation2 + $0xe8] sm:$0xf0] %v668_v40  ;;  %624 = vst [vmem:[#allocation2 + $0xf0] sm:$0xf] %v606_v41  ;;  %1568 = vrot.lane.b32.xlu1 %v2904_v60, %s2643_s20  ;;  %1566 = vrot.lane.b32.xlu0 %v2845_v29, %s2643_s20  ;;  %v3070_v40 = vcombine.low %v3043_v27, %v3043_v27 }
  0xc8   : > { %v278_v42 = vpop.permute.xlu1 %277  ;;  %v2965_v44 = vpop.permute.xlu0 %653 }
  0xc9   : > { %v292_v46 = vsel %vm287_vm2, %v2857_v39, %v278_v42  ;;  %v669_v47 = vsel %vm665_vm6, %v652_v37, %v2965_v44  ;;  %v777_v59 = vld [vmem:[#allocation2 + $0xa8] sm:$0xff] }
  0xca   : > { %310 = vst [vmem:[#allocation2 + $0x20] sm:$0xf0] %v292_v46  ;;  %687 = vst [vmem:[#allocation2 + $0xf0] sm:$0xf0] %v669_v47  ;;  %1630 = vrot.lane.b32.xlu1 %v2877_v49, %s2644_s21  ;;  %1628 = vrot.lane.b32.xlu0 %v2849_v32, %s2644_s21 }
  0xcc   : > { %v341_v48 = vpop.permute.xlu1 %340  ;;  %v280_v50 = vpop.permute.xlu0 %279 }
  0xcd   : > { %v355_v51 = vsel %vm350_vm0, %v2871_v45, %v341_v48  ;;  %v293_v52 = vsel %vm287_vm2, %v278_v42, %v280_v50  ;;  %v785_v56 = vld [vmem:[#allocation2 + $0xe8] sm:$0xff] }
  0xce   : > { %373 = vst [vmem:[#allocation2 + $0x68] sm:$0xf] %v355_v51  ;;  %311 = vst [vmem:[#allocation2 + $0x28] sm:$0xf0] %v293_v52  ;;  %1692 = vrot.lane.b32.xlu1 %v2904_v60, %s2645_s22  ;;  %1690 = vrot.lane.b32.xlu0 %v2845_v29, %s2645_s22  ;;  %v2523_v0 = vpack.c.bf16 %v785_v56, %v776_v63 }
  0xd0   : > { %v404_v39 = vpop.permute.xlu1 %403  ;;  %v343_v55 = vpop.permute.xlu0 %342 }
  0xd1   : > { %v418_v58 = vsel %vm413_vm1, %v2884_v53, %v404_v39  ;;  %v356_v45 = vsel %vm350_vm0, %v341_v48, %v343_v55  ;;  %v786_v61 = vld [vmem:[#allocation2 + $0xf0] sm:$0xff]  ;;  %v2988_v62 = vld [vmem:[#allocation2 + $0x20] sm:$0xff] }
  0xd2   : > { %436 = vst [vmem:[#allocation2 + $0x68] sm:$0xf0] %v418_v58  ;;  %374 = vst [vmem:[#allocation2 + $0x70] sm:$0xf] %v356_v45  ;;  %1564 = vrot.lane.b32.xlu1 %v2926_v17, %s2643_s20  ;;  %1502 = vrot.lane.b32.xlu0 %v2845_v29, %s2642_s19  ;;  %v2521_v60 = vpack.c.bf16 %v786_v61, %v777_v59 }
  0xd3   : > { %1296 = vst [vmem:[#allocation2 + $0x20] sm:$0xf] %v2983_v57 }
  0xd4   : > { %v711_v53 = vpop.permute.xlu1 %710  ;;  %v406_v1 = vpop.permute.xlu0 %405  ;;  %2522 = vmatprep.subr.bf16.mxu1 %v2521_v60 }
  0xd5   : > { %v419_v3 = vsel %vm413_vm1, %v404_v39, %v406_v1  ;;  %2524 = vmatpush1.bf16.msra.mxu1 %v2523_v0  ;;  %v761_v4 = vld [vmem:[#allocation2 + $0x28] sm:$0xff] }
  0xd6   : > { %437 = vst [vmem:[#allocation2 + $0x70] sm:$0xf0] %v419_v3  ;;  %1688 = vrot.lane.b32.xlu1 %v2926_v17, %s2645_s22  ;;  %1626 = vrot.lane.b32.xlu0 %v2845_v29, %s2644_s21  ;;  %1297 = vst [vmem:[#allocation2 + $0x28] sm:$0xf] %v2997_v2 }
  0xd8   : > { %v709_v6 = vpop.permute.xlu1 %708  ;;  %v3009_v7 = vpop.permute.xlu0 %712 }
  0xd9   : > { %v729_v8 = vsel %vm728_vm7, %v709_v6, %v711_v53  ;;  %v730_v9 = vsel %vm728_vm7, %v711_v53, %v3009_v7  ;;  %v769_v23 = vld [vmem:[#allocation2 + $0x68] sm:$0xff] }
  0xda   : > { %747 = vst [vmem:[#allocation2 + $0x120] sm:$0xf] %v729_v8  ;;  %748 = vst [vmem:[#allocation2 + $0x128] sm:$0xf] %v730_v9  ;;  %1324 = vrot.lane.b32.xlu1 %v3006_v5, %s2640_s17  ;;  %1322 = vrot.lane.b32.xlu0 %v2877_v49, %s2640_s17  ;;  %v2527_v31 = vpack.c.bf16 %v769_v23, %v2988_v62 }
  0xdc   : > { %v3018_v10 = vpop.permute.xlu1 %283  ;;  %v282_v11 = vpop.permute.xlu0 %281 }
  0xdd   : > { %v294_v14 = vsel %vm287_vm2, %v280_v50, %v282_v11  ;;  %v295_v15 = vsel %vm287_vm2, %v282_v11, %v3018_v10  ;;  %v770_v18 = vld [vmem:[#allocation2 + $0x70] sm:$0xff] }
  0xde   : > { %312 = vst [vmem:[#allocation2 + $0x30] sm:$0xf0] %v294_v14  ;;  %313 = vst [vmem:[#allocation2 + $0x38] sm:$0xf0] %v295_v15  ;;  %1386 = vrot.lane.b32.xlu1 %v2983_v57, %s2639_s16  ;;  %1384 = vrot.lane.b32.xlu0 %v2888_v54, %s2639_s16  ;;  %v2525_v25 = vpack.c.bf16 %v770_v18, %v761_v4 }
  0xe0   : > { %v3027_v16 = vpop.permute.xlu1 %346  ;;  %v345_v17 = vpop.permute.xlu0 %344 }
  0xe1   : > { %v357_v19 = vsel %vm350_vm0, %v343_v55, %v345_v17  ;;  %v358_v20 = vsel %vm350_vm0, %v345_v17, %v3027_v16  ;;  %v793_v21 = vld [vmem:[#allocation2 + $0x128] sm:$0xf]  ;;  %v792_v22 = vld [vmem:[#allocation2 + $0x120] sm:$0xf] }
  0xe2   : > { %375 = vst [vmem:[#allocation2 + $0x78] sm:$0xf] %v357_v19  ;;  %376 = vst [vmem:[#allocation2 + $0x80] sm:$0xf] %v358_v20  ;;  %1448 = vrot.lane.b32.xlu1 %v3006_v5, %s2641_s18  ;;  %1446 = vrot.lane.b32.xlu0 %v2877_v49, %s2641_s18 }
  0xe3   : > { %2387 = vmatprep.subr.msk.mxu0 %vm805_vm8, %v793_v21 }
  0xe4   : > { %2388 = vmatpush1.msk.msra.mxu0 %vm805_vm8, %v792_v22  ;;  %v3046_v28 = vpop.permute.xlu1 %409  ;;  %v408_v30 = vpop.permute.xlu0 %407 }
  0xe5   : > { %v420_v34 = vsel %vm413_vm1, %v406_v1, %v408_v30  ;;  %v421_v35 = vsel %vm413_vm1, %v408_v30, %v3046_v28  ;;  %2526 = vmatprep.subr.bf16.mxu0 %v2525_v25  ;;  %2389 = vmatmul.mubr.msk.f32.vlgmr.msra.gmra.mrb[0].mxu0 %vm801_vm9, %v3039_v24  ;;  %v3058_v36 = vld [vmem:[#allocation2 + $0x38] sm:$0xff]  ;;  %v3060_v37 = vld [vmem:[#allocation2 + $0x30] sm:$0xff] }
  0xe6   : > { %438 = vst [vmem:[#allocation2 + $0x78] sm:$0xf0] %v420_v34  ;;  %439 = vst [vmem:[#allocation2 + $0x80] sm:$0xf0] %v421_v35  ;;  %2528 = vmatpush1.bf16.msra.mxu0 %v2527_v31  ;;  %1326 = vrot.lane.b32.xlu1 %v2983_v57, %s2640_s17 }
  0xe7   : > { %1299 = vst [vmem:[#allocation2 + $0x38] sm:$0xf] %v3051_v33  ;;  %1298 = vst [vmem:[#allocation2 + $0x30] sm:$0xf] %v3043_v27  ;;  %726 = vrot.lane.b32.xlu0 %v2864_v43, %s2646_s23  ;;  %1039 = vmatprep.mubr.f32.mxu0 %v2647_v13 }
  0xe8   : > { %v469_v41 = vpop.permute.xlu1 %468  ;;  %v467_v42 = vpop.permute.xlu0 %466 }
  0xe9   : > { %v481_v46 = vsel %vm476_vm3, %v2938_v26, %v467_v42  ;;  %v482_v47 = vsel %vm476_vm3, %v467_v42, %v469_v41 }
  0xea   : > { %499 = vst [vmem:[#allocation2 + $0xb0] sm:$0xf] %v481_v46  ;;  %500 = vst [vmem:[#allocation2 + $0xb8] sm:$0xf] %v482_v47  ;;  %1388 = vrot.lane.b32.xlu1 %v2997_v2, %s2639_s16 }
  0xeb   : > { %1328 = vrot.lane.b32.xlu0 %v3070_v40, %s2640_s17 }
  0xec   : > { %v532_v43 = vpop.permute.xlu1 %531  ;;  %v530_v48 = vpop.permute.xlu0 %529 }
  0xed   : > { %v544_v50 = vsel %vm539_vm4, %v2947_v12, %v530_v48  ;;  %v545_v51 = vsel %vm539_vm4, %v530_v48, %v532_v43  ;;  %v772_v8 = vld [vmem:[#allocation2 + $0x80] sm:$0xff]  ;;  %v771_v14 = vld [vmem:[#allocation2 + $0x78] sm:$0xff] }
  0xee   : > { %562 = vst [vmem:[#allocation2 + $0xb0] sm:$0xf0] %v544_v50  ;;  %563 = vst [vmem:[#allocation2 + $0xb8] sm:$0xf0] %v545_v51  ;;  %1450 = vrot.lane.b32.xlu1 %v2983_v57, %s2641_s18  ;;  %v2533_v20 = vpack.c.bf16 %v772_v8, %v3058_v36  ;;  %v2535_v21 = vpack.c.bf16 %v771_v14, %v3060_v37 }
  0xef   : > { %1390 = vrot.lane.b32.xlu0 %v3043_v27, %s2639_s16 }
  0xf0   : > { %v595_v26 = vpop.permute.xlu1 %594  ;;  %v593_v52 = vpop.permute.xlu0 %592 }
  0xf1   : > { %v607_v39 = vsel %vm602_vm5, %v2956_v38, %v593_v52  ;;  %v608_v55 = vsel %vm602_vm5, %v593_v52, %v595_v26  ;;  %v3174_v52 = vld [vmem:[%s2679_s15 + $0x48] sm:$0xff] }
  0xf2   : > { %625 = vst [vmem:[#allocation2 + $0xf8] sm:$0xf] %v607_v39  ;;  %626 = vst [vmem:[#allocation2 + $0x100] sm:$0xf] %v608_v55  ;;  %1508 = vrot.lane.b32.xlu1 %v2888_v54, %s2642_s19 }
  0xf3   : > { %1452 = vrot.lane.b32.xlu0 %v3070_v40, %s2641_s18 }
  0xf4   : > { %v3094_v12 = vpop.permute.xlu1 %657  ;;  %v656_v56 = vpop.permute.xlu0 %655 }
  0xf5   : > { %v670_v58 = vsel %vm665_vm6, %v2965_v44, %v656_v56  ;;  %v671_v45 = vsel %vm665_vm6, %v656_v56, %v3094_v12  ;;  %v779_v63 = vld [vmem:[#allocation2 + $0xb8] sm:$0xff]  ;;  %v778_v3 = vld [vmem:[#allocation2 + $0xb0] sm:$0xff] }
  0xf6   : > { %688 = vst [vmem:[#allocation2 + $0xf8] sm:$0xf0] %v670_v58  ;;  %689 = vst [vmem:[#allocation2 + $0x100] sm:$0xf0] %v671_v45  ;;  %1570 = vrot.lane.b32.xlu1 %v2877_v49, %s2643_s20  ;;  %v3184_v58 = vcombine.low %v3174_v52, %v3174_v52 }
  0xf7   : > { %1510 = vrot.lane.b32.xlu0 %v2983_v57, %s2642_s19 }
  0xf8   : > { %v3104_v38 = vpop.permute.xlu1 %716  ;;  %v715_v59 = vpop.permute.xlu0 %714 }
  0xf9   : > { %v731_v61 = vsel %vm728_vm7, %v3009_v7, %v715_v59  ;;  %v732_v44 = vsel %vm728_vm7, %v715_v59, %v3104_v38  ;;  %v2648_v59 = vmov 0.0|0.0  }
  0xfa   : > { %749 = vst [vmem:[#allocation2 + $0x130] sm:$0xf] %v731_v61  ;;  %750 = vst [vmem:[#allocation2 + $0x138] sm:$0xf] %v732_v44  ;;  %1632 = vrot.lane.b32.xlu1 %v2888_v54, %s2644_s21 }
  0xfb   : > { %1572 = vrot.lane.b32.xlu0 %v3006_v5, %s2643_s20 }
  0xfc   : > { %v3114_v62 = vpop.permute.xlu1 %472  ;;  %v471_v60 = vpop.permute.xlu0 %470 }
  0xfd   : > { %v483_v0 = vsel %vm476_vm3, %v469_v41, %v471_v60  ;;  %v484_v53 = vsel %vm476_vm3, %v471_v60, %v3114_v62  ;;  %v788_v1 = vld [vmem:[#allocation2 + $0x100] sm:$0xff]  ;;  %v787_v4 = vld [vmem:[#allocation2 + $0xf8] sm:$0xff] }
  0xfe   : > { %501 = vst [vmem:[#allocation2 + $0xc0] sm:$0xf] %v483_v0  ;;  %502 = vst [vmem:[#allocation2 + $0xc8] sm:$0xf] %v484_v53  ;;  %1694 = vrot.lane.b32.xlu1 %v2877_v49, %s2645_s22  ;;  %v2529_v6 = vpack.c.bf16 %v788_v1, %v779_v63  ;;  %v2531_v7 = vpack.c.bf16 %v787_v4, %v778_v3 }
  0xff   : > { %1634 = vrot.lane.b32.xlu0 %v2983_v57, %s2644_s21 }
 0x100   : > { %v3123_v9 = vpop.permute.xlu1 %535  ;;  %v534_v11 = vpop.permute.xlu0 %533  ;;  %2530 = vmatprep.subr.bf16.mxu0 %v2529_v6 }
 0x101   : > { %v546_v15 = vsel %vm539_vm4, %v532_v43, %v534_v11  ;;  %v547_v17 = vsel %vm539_vm4, %v534_v11, %v3123_v9  ;;  %2532 = vmatpush1.bf16.msra.mxu0 %v2531_v7  ;;  %v795_v18 = vld [vmem:[#allocation2 + $0x138] sm:$0xf]  ;;  %v794_v19 = vld [vmem:[#allocation2 + $0x130] sm:$0xf] }
 0x102   : > { %564 = vst [vmem:[#allocation2 + $0xc0] sm:$0xf0] %v546_v15  ;;  %565 = vst [vmem:[#allocation2 + $0xc8] sm:$0xf0] %v547_v17  ;;  %1752 = vrot.lane.b32.xlu1 %v2849_v32, %s2646_s23  ;;  %2390 = vmatprep.subr.msk.mxu1 %vm805_vm8, %v795_v18 }
 0x103   : > { %1696 = vrot.lane.b32.xlu0 %v3006_v5, %s2645_s22  ;;  %2391 = vmatpush1.msk.msra.mxu1 %vm805_vm8, %v794_v19 }
 0x104   : > { %v3136_v22 = vpop.permute.xlu1 %598  ;;  %v597_v23 = vpop.permute.xlu0 %596  ;;  %2534 = vmatprep.subr.bf16.mxu1 %v2533_v20  ;;  %2392 = vmatmul.mubr.msk.f32.vlgmr.msra.gmra.mrb[0].mxu1 %vm801_vm9, %v3039_v24 }
 0x105   : > { %v609_v32 = vsel %vm602_vm5, %v595_v26, %v597_v23  ;;  %v610_v25 = vsel %vm602_vm5, %v597_v23, %v3136_v22  ;;  %2536 = vmatpush1.bf16.msra.mxu1 %v2535_v21  ;;  %1110 = vmatprep.mubr.f32.mxu1 %v2647_v13 }
 0x106   : > { %627 = vst [vmem:[#allocation2 + $0x108] sm:$0xf] %v609_v32  ;;  %628 = vst [vmem:[#allocation2 + $0x110] sm:$0xf] %v610_v25  ;;  %1750 = vrot.lane.b32.xlu1 %v2845_v29, %s2646_s23 }
 0x107   : > { %1754 = vrot.lane.b32.xlu0 %v2877_v49, %s2646_s23 }
 0x108   : > { %v3148_v5 = vpop.permute.xlu1 %661  ;;  %v660_v30 = vpop.permute.xlu0 %659 }
 0x109   : > { %v672_v31 = vsel %vm665_vm6, %v3094_v12, %v660_v30  ;;  %v673_v34 = vsel %vm665_vm6, %v660_v30, %v3148_v5  ;;  %v781_v42 = vld [vmem:[#allocation2 + $0xc8] sm:$0xff]  ;;  %v780_v48 = vld [vmem:[#allocation2 + $0xc0] sm:$0xff] }
 0x10a   : > { %690 = vst [vmem:[#allocation2 + $0x108] sm:$0xf0] %v672_v31  ;;  %691 = vst [vmem:[#allocation2 + $0x110] sm:$0xf0] %v673_v34  ;;  %1514 = vrot.lane.b32.xlu1 %v3043_v27, %s2642_s19 }
 0x10b   : > { %1512 = vrot.lane.b32.xlu0 %v2997_v2, %s2642_s19 }
 0x10c   : > { %v721_v29 = vpop.permute.xlu1 %720  ;;  %v719_v35 = vpop.permute.xlu0 %718 }
 0x10d   : > { %v733_v49 = vsel %vm728_vm7, %v3104_v38, %v719_v35  ;;  %v734_v36 = vsel %vm728_vm7, %v719_v35, %v721_v29 }
 0x10e   : > { %751 = vst [vmem:[#allocation2 + $0x140] sm:$0xf] %v733_v49  ;;  %752 = vst [vmem:[#allocation2 + $0x148] sm:$0xf] %v734_v36  ;;  %1576 = vrot.lane.b32.xlu1 %v3070_v40, %s2643_s20 }
 0x10f   : > { %1574 = vrot.lane.b32.xlu0 %v2983_v57, %s2643_s20 }
 0x110   : > { %v349_v37 = vpop.permute.xlu1 %348  ;;  %v286_v41 = vpop.permute.xlu0 %285 }
 0x111   : > { %v359_v46 = vsel %vm350_vm0, %v3027_v16, %v349_v37  ;;  %v296_v47 = vsel %vm287_vm2, %v3018_v10, %v286_v41  ;;  %v790_v43 = vld [vmem:[#allocation2 + $0x110] sm:$0xff]  ;;  %v789_v50 = vld [vmem:[#allocation2 + $0x108] sm:$0xff] }
 0x112   : > { %377 = vst [vmem:[#allocation2 + $0x88] sm:$0xf] %v359_v46  ;;  %314 = vst [vmem:[#allocation2 + $0x40] sm:$0xf0] %v296_v47  ;;  %1638 = vrot.lane.b32.xlu1 %v3043_v27, %s2644_s21  ;;  %v2537_v51 = vpack.c.bf16 %v790_v43, %v781_v42  ;;  %v2539_v26 = vpack.c.bf16 %v789_v50, %v780_v48  ;;  %v1377_v43 = vcombine.high %v3174_v52, %v3174_v52 }
 0x113   : > { %1636 = vrot.lane.b32.xlu0 %v2997_v2, %s2644_s21 }
 0x114   : > { %v723_v16 = vpop.permute.xlu1 %722  ;;  %v412_v39 = vpop.permute.xlu0 %411  ;;  %2538 = vmatprep.subr.bf16.mxu1 %v2537_v51 }
 0x115   : > { %v735_v10 = vsel %vm728_vm7, %v721_v29, %v723_v16  ;;  %v422_v55 = vsel %vm413_vm1, %v3046_v28, %v412_v39  ;;  %2540 = vmatpush1.bf16.msra.mxu1 %v2539_v26  ;;  %v797_v12 = vld [vmem:[#allocation2 + $0x148] sm:$0xf]  ;;  %v796_v56 = vld [vmem:[#allocation2 + $0x140] sm:$0xf] }
 0x116   : > { %753 = vst [vmem:[#allocation2 + $0x150] sm:$0xf] %v735_v10  ;;  %440 = vst [vmem:[#allocation2 + $0x88] sm:$0xf0] %v422_v55  ;;  %1700 = vrot.lane.b32.xlu1 %v3070_v40, %s2645_s22  ;;  %2393 = vmatprep.subr.msk.mxu0 %vm805_vm8, %v797_v12  ;;  %v2405_v28 = vld [vmem:[%s2679_s15 + $0x48] sm:$0xf] }
 0x117   : > { %1698 = vrot.lane.b32.xlu0 %v2983_v57, %s2645_s22  ;;  %2394 = vmatpush1.msk.msra.mxu0 %vm805_vm8, %v796_v56 }
 0x118   : > { %v1319_v45 = vpop.permute.xlu1 %1318  ;;  %v3190_v38 = vpop.permute.xlu0 %724  ;;  %2541 = vmatprep.subr.bf16.mxu0 %v2648_v59  ;;  %2395 = vmatmul.mubr.msk.f32.vlgmr.msra.gmra.mrb[2].mxu0 %vm801_vm9, %v3039_v24 }
 0x119   : > { %v736_v40 = vsel %vm728_vm7, %v723_v16, %v3190_v38  ;;  %v764_v61 = vld [vmem:[#allocation2 + $0x40] sm:$0xff]  ;;  %2493 = vmatprep.mubr.msk.f32.mxu0 %vm2649_vm10, %v2647_v13 }
 0x11a   : > { %754 = vst [vmem:[#allocation2 + $0x158] sm:$0xf] %v736_v40  ;;  %1332 = vrot.lane.b32.xlu1 %v3184_v58, %s2640_s17  ;;  %1300 = vst [vmem:[#allocation2 + $0x40] sm:$0xf] %v2405_v28 }
 0x11b   : > { %1330 = vrot.lane.b32.xlu0 %v3043_v27, %s2640_s17 }
 0x11c   : > { %v1381_v44 = vpop.permute.xlu1 %1380  ;;  %v3203_v60 = vpop.permute.xlu0 %1320 }
 0x11d   : > { %v1337_v63 = vsel %vm287_vm2, %v1319_v45, %v3203_v60  ;;  %v773_v0 = vld [vmem:[#allocation2 + $0x88] sm:$0xff]  ;;  %v798_v7 = vld [vmem:[#allocation2 + $0x150] sm:$0xf] }
 0x11e   : > { %1355 = vst [vmem:[#allocation2 + $0x8] sm:$0xf0] %v1337_v63  ;;  %1394 = vrot.lane.b32.xlu1 %v3174_v52, %s2639_s16  ;;  %v2542_v53 = vpack.c.bf16 %v773_v0, %v764_v61 }
 0x11f   : > { %1392 = vrot.lane.b32.xlu0 %v3051_v33, %s2639_s16 }
 0x120   : > { %v1443_v1 = vpop.permute.xlu1 %1442  ;;  %v3211_v3 = vpop.permute.xlu0 %1382  ;;  %2543 = vmatpush3.bf16.msra.mxu0 %v2542_v53 }
 0x121   : > { %v1399_v4 = vsel %vm350_vm0, %v1381_v44, %v3211_v3  ;;  %v799_v6 = vld [vmem:[#allocation2 + $0x158] sm:$0xf]  ;;  %2544 = vmatprep.subr.bf16.mxu0 %v2648_v59 }
 0x122   : > { %1417 = vst [vmem:[#allocation2 + $0x50] sm:$0xf] %v1399_v4  ;;  %1456 = vrot.lane.b32.xlu1 %v3184_v58, %s2641_s18  ;;  %2396 = vmatprep.subr.msk.mxu1 %vm805_vm8, %v799_v6 }
 0x123   : > { %1454 = vrot.lane.b32.xlu0 %v3043_v27, %s2641_s18  ;;  %2397 = vmatpush1.msk.msra.mxu1 %vm805_vm8, %v798_v7 }
 0x124   : > { %v475_v8 = vpop.permute.xlu1 %474  ;;  %v3222_v11 = vpop.permute.xlu0 %1444  ;;  %2398 = vmatmul.mubr.msk.f32.vlgmr.msra.gmra.mrb[2].mxu1 %vm801_vm9, %v3039_v24 }
 0x125   : > { %v485_v14 = vsel %vm476_vm3, %v3114_v62, %v475_v8  ;;  %v1461_v15 = vsel %vm413_vm1, %v1443_v1, %v3222_v11  ;;  %1933 = vmatprep.mubr.f32.mxu1 %v2647_v13  ;;  %v1798_v23 = vld [vmem:[#allocation2 + $0x8] sm:$0xff] }
 0x126   : > { %503 = vst [vmem:[#allocation2 + $0xd0] sm:$0xf] %v485_v14  ;;  %1479 = vst [vmem:[#allocation2 + $0x50] sm:$0xf0] %v1461_v15  ;;  %1758 = vrot.lane.b32.xlu1 %v2983_v57, %s2646_s23 }
 0x127   : > { %1756 = vrot.lane.b32.xlu0 %v2888_v54, %s2646_s23 }
 0x128   : > { %v601_v17 = vpop.permute.xlu1 %600  ;;  %v538_v18 = vpop.permute.xlu0 %537 }
 0x129   : > { %v611_v19 = vsel %vm602_vm5, %v3136_v22, %v601_v17  ;;  %v548_v62 = vsel %vm539_vm4, %v3123_v9, %v538_v18 }
 0x12a   : > { %629 = vst [vmem:[#allocation2 + $0x118] sm:$0xf] %v611_v19  ;;  %566 = vst [vmem:[#allocation2 + $0xd0] sm:$0xf0] %v548_v62  ;;  %1518 = vrot.lane.b32.xlu1 %v3174_v52, %s2642_s19 }
 0x12b   : > { %1516 = vrot.lane.b32.xlu0 %v3051_v33, %s2642_s19 }
 0x12c   : > { %v1317_v57 = vpop.permute.xlu1 %1316  ;;  %v664_v20 = vpop.permute.xlu0 %663 }
 0x12d   : > { %v1336_v54 = vsel %vm287_vm2, %v1317_v57, %v1319_v45  ;;  %v674_v21 = vsel %vm665_vm6, %v3148_v5, %v664_v20  ;;  %v1807_v22 = vld [vmem:[#allocation2 + $0x50] sm:$0xff] }
 0x12e   : > { %1354 = vst [vmem:[#allocation2] sm:$0xf0] %v1336_v54  ;;  %692 = vst [vmem:[#allocation2 + $0x118] sm:$0xf0] %v674_v21  ;;  %1580 = vrot.lane.b32.xlu1 %v3184_v58, %s2643_s20  ;;  %v2547_v9 = vpack.c.bf16 %v1807_v22, %v1798_v23 }
 0x12f   : > { %1578 = vrot.lane.b32.xlu0 %v3043_v27, %s2643_s20 }
 0x130   : > { %v1441_v32 = vpop.permute.xlu1 %1440  ;;  %v1379_v25 = vpop.permute.xlu0 %1378  ;;  %2548 = vmatprep.subr.bf16.mxu1 %v2547_v9 }
 0x131   : > { %v1460_v30 = vsel %vm413_vm1, %v1441_v32, %v1443_v1  ;;  %v1398_v31 = vsel %vm350_vm0, %v1379_v25, %v1381_v44  ;;  %v782_v35 = vld [vmem:[#allocation2 + $0xd0] sm:$0xff] }
 0x132   : > { %1478 = vst [vmem:[#allocation2 + $0x48] sm:$0xf0] %v1460_v30  ;;  %1416 = vst [vmem:[#allocation2 + $0x48] sm:$0xf] %v1398_v31  ;;  %1642 = vrot.lane.b32.xlu1 %v3174_v52, %s2644_s21 }
 0x133   : > { %1640 = vrot.lane.b32.xlu0 %v3051_v33, %s2644_s21 }
 0x134   : > { %v3256_v5 = vpop.permute.xlu1 %1506  ;;  %v1505_v34 = vpop.permute.xlu0 %1504 }
 0x135   : > { %v1523_v29 = vsel %vm476_vm3, %v1505_v34, %v3256_v5  ;;  %v791_v49 = vld [vmem:[#allocation2 + $0x118] sm:$0xff]  ;;  %v1797_v46 = vld [vmem:[#allocation2] sm:$0xff] }
 0x136   : > { %1541 = vst [vmem:[#allocation2 + $0x98] sm:$0xf] %v1523_v29  ;;  %1704 = vrot.lane.b32.xlu1 %v3184_v58, %s2645_s22  ;;  %v2545_v36 = vpack.c.bf16 %v791_v49, %v782_v35 }
 0x137   : > { %1702 = vrot.lane.b32.xlu0 %v3043_v27, %s2645_s22 }
 0x138   : > { %v3264_v37 = vpop.permute.xlu1 %1568  ;;  %v1567_v41 = vpop.permute.xlu0 %1566  ;;  %2546 = vmatpush3.bf16.msra.mxu0 %v2545_v36 }
 0x139   : > { %v1585_v42 = vsel %vm539_vm4, %v1567_v41, %v3264_v37  ;;  %v1806_v47 = vld [vmem:[#allocation2 + $0x48] sm:$0xff]  ;;  %2491 = vmatprep.subr.mxu0 %v2647_v13 }
 0x13a   : > { %1603 = vst [vmem:[#allocation2 + $0x98] sm:$0xf0] %v1585_v42  ;;  %1762 = vrot.lane.b32.xlu1 %v3043_v27, %s2646_s23  ;;  %v2549_v48 = vpack.c.bf16 %v1806_v47, %v1797_v46 }
 0x13b   : > { %1760 = vrot.lane.b32.xlu0 %v2997_v2, %s2646_s23 }
 0x13c   : > { %v3275_v50 = vpop.permute.xlu1 %1630  ;;  %v1629_v51 = vpop.permute.xlu0 %1628  ;;  %2550 = vmatpush1.bf16.msra.mxu1 %v2549_v48 }
 0x13d   : > { %v1647_v26 = vsel %vm602_vm5, %v1629_v51, %v3275_v50 }
 0x13e   : > { %1665 = vst [vmem:[#allocation2 + $0xe0] sm:$0xf] %v1647_v26  ;;  %1396 = vrot.lane.b32.xlu1 %v1377_v43, %s2639_s16 }
 0x13f   : > { %1334 = vrot.lane.b32.xlu0 %v3174_v52, %s2640_s17 }
 0x140   : > { %v3282_v16 = vpop.permute.xlu1 %1692  ;;  %v1691_v27 = vpop.permute.xlu0 %1690 }
 0x141   : > { %v1709_v39 = vsel %vm665_vm6, %v1691_v27, %v3282_v16  ;;  %v1816_v40 = vld [vmem:[#allocation2 + $0x98] sm:$0xff] }
 0x142   : > { %1727 = vst [vmem:[#allocation2 + $0xe0] sm:$0xf0] %v1709_v39  ;;  %1520 = vrot.lane.b32.xlu1 %v1377_v43, %s2642_s19 }
 0x143   : > { %1458 = vrot.lane.b32.xlu0 %v3174_v52, %s2641_s18 }
 0x144   : > { %v1565_v2 = vpop.permute.xlu1 %1564  ;;  %v1503_v10 = vpop.permute.xlu0 %1502 }
 0x145   : > { %v1584_v55 = vsel %vm539_vm4, %v1565_v2, %v1567_v41  ;;  %v1522_v12 = vsel %vm476_vm3, %v1503_v10, %v1505_v34 }
 0x146   : > { %1602 = vst [vmem:[#allocation2 + $0x90] sm:$0xf0] %v1584_v55  ;;  %1540 = vst [vmem:[#allocation2 + $0x90] sm:$0xf] %v1522_v12  ;;  %1644 = vrot.lane.b32.xlu1 %v1377_v43, %s2644_s21 }
 0x147   : > { %1582 = vrot.lane.b32.xlu0 %v3174_v52, %s2643_s20 }
 0x148   : > { %v1689_v56 = vpop.permute.xlu1 %1688  ;;  %v1627_v58 = vpop.permute.xlu0 %1626 }
 0x149   : > { %v1708_v28 = vsel %vm665_vm6, %v1689_v56, %v1691_v27  ;;  %v1646_v45 = vsel %vm602_vm5, %v1627_v58, %v1629_v51  ;;  %v1825_v61 = vld [vmem:[#allocation2 + $0xe0] sm:$0xff] }
 0x14a   : > { %1726 = vst [vmem:[#allocation2 + $0xd8] sm:$0xf0] %v1708_v28  ;;  %1664 = vst [vmem:[#allocation2 + $0xd8] sm:$0xf] %v1646_v45  ;;  %1764 = vrot.lane.b32.xlu1 %v3051_v33, %s2646_s23  ;;  %v2551_v44 = vpack.c.bf16 %v1825_v61, %v1816_v40 }
 0x14b   : > { %1706 = vrot.lane.b32.xlu0 %v3174_v52, %s2645_s22 }
 0x14c   : > { %v1325_v63 = vpop.permute.xlu1 %1324  ;;  %v1323_v0 = vpop.permute.xlu0 %1322  ;;  %2552 = vmatprep.subr.bf16.mxu1 %v2551_v44 }
 0x14d   : > { %v1338_v53 = vsel %vm287_vm2, %v3203_v60, %v1323_v0  ;;  %v1339_v1 = vsel %vm287_vm2, %v1323_v0, %v1325_v63  ;;  %v1815_v8 = vld [vmem:[#allocation2 + $0x90] sm:$0xff] }
 0x14e   : > { %1356 = vst [vmem:[#allocation2 + $0x10] sm:$0xf0] %v1338_v53  ;;  %1357 = vst [vmem:[#allocation2 + $0x18] sm:$0xf0] %v1339_v1  ;;  %1768 = vrot.lane.b32.xlu1 %v1377_v43, %s2646_s23 }
 0x14f   : > { %1766 = vrot.lane.b32.xlu0 %v3174_v52, %s2646_s23 }
 0x150   : > { %v1387_v33 = vpop.permute.xlu1 %1386  ;;  %v1385_v4 = vpop.permute.xlu0 %1384 }
 0x151   : > { %v1400_v6 = vsel %vm350_vm0, %v3211_v3, %v1385_v4  ;;  %v1401_v7 = vsel %vm350_vm0, %v1385_v4, %v1387_v33  ;;  %v1824_v14 = vld [vmem:[#allocation2 + $0xd8] sm:$0xff] }
 0x152   : > { %1418 = vst [vmem:[#allocation2 + $0x58] sm:$0xf] %v1400_v6  ;;  %1419 = vst [vmem:[#allocation2 + $0x60] sm:$0xf] %v1401_v7  ;;  %v2553_v60 = vpack.c.bf16 %v1824_v14, %v1815_v8 }
 0x154   : > { %v1449_v15 = vpop.permute.xlu1 %1448  ;;  %v1447_v17 = vpop.permute.xlu0 %1446  ;;  %2554 = vmatpush1.bf16.msra.mxu1 %v2553_v60 }
 0x155   : > { %v1462_v18 = vsel %vm413_vm1, %v3222_v11, %v1447_v17  ;;  %v1463_v52 = vsel %vm413_vm1, %v1447_v17, %v1449_v15  ;;  %v1800_v30 = vld [vmem:[#allocation2 + $0x18] sm:$0xff]  ;;  %v1799_v29 = vld [vmem:[#allocation2 + $0x10] sm:$0xff] }
 0x156   : > { %1480 = vst [vmem:[#allocation2 + $0x58] sm:$0xf0] %v1462_v18  ;;  %1481 = vst [vmem:[#allocation2 + $0x60] sm:$0xf0] %v1463_v52 }
 0x158   : > { %v1327_v19 = vpop.permute.xlu1 %1326 }
 0x159   : > { %v1340_v3 = vsel %vm287_vm2, %v1325_v63, %v1327_v19  ;;  %v727_v62 = vpop.permute.xlu0 %726 }
 0x15a   : > { %1358 = vst [vmem:[#allocation2 + $0x20] sm:$0xf0] %v1340_v3  ;;  %v737_v57 = vsel %vm728_vm7, %v3190_v38, %v727_v62 }
 0x15b   : > { %755 = vst [vmem:[#allocation2 + $0x160] sm:$0xf] %v737_v57 }
 0x15c   : > { %v1389_v20 = vpop.permute.xlu1 %1388 }
 0x15d   : > { %v1402_v54 = vsel %vm350_vm0, %v1387_v33, %v1389_v20  ;;  %v3316_v21 = vpop.permute.xlu0 %1328  ;;  %v1809_v23 = vld [vmem:[#allocation2 + $0x60] sm:$0xff]  ;;  %v1808_v9 = vld [vmem:[#allocation2 + $0x58] sm:$0xff] }
 0x15e   : > { %1420 = vst [vmem:[#allocation2 + $0x68] sm:$0xf] %v1402_v54  ;;  %v1341_v11 = vsel %vm287_vm2, %v1327_v19, %v3316_v21  ;;  %v2555_v34 = vpack.c.bf16 %v1809_v23, %v1800_v30  ;;  %v2557_v35 = vpack.c.bf16 %v1808_v9, %v1799_v29 }
 0x15f   : > { %1359 = vst [vmem:[#allocation2 + $0x28] sm:$0xf0] %v1341_v11 }
 0x160   : > { %v1451_v22 = vpop.permute.xlu1 %1450 }
 0x161   : > { %v1464_v32 = vsel %vm413_vm1, %v1449_v15, %v1451_v22  ;;  %v3321_v25 = vpop.permute.xlu0 %1390  ;;  %v1801_v3 = vld [vmem:[#allocation2 + $0x20] sm:$0xff] }
 0x162   : > { %1482 = vst [vmem:[#allocation2 + $0x68] sm:$0xf0] %v1464_v32  ;;  %v1403_v38 = vsel %vm350_vm0, %v1389_v20, %v3321_v25  ;;  %v800_v31 = vld [vmem:[#allocation2 + $0x160] sm:$0xf] }
 0x163   : > { %1421 = vst [vmem:[#allocation2 + $0x70] sm:$0xf] %v1403_v38  ;;  %2492 = vmatpush3.msk.msra.mxu0 %vm805_vm8, %v800_v31 }
 0x164   : > { %2494 = vmatmul.mubr.msk.f32.vlgmr.msra.gmra.mrb[4].mxu0 %vm801_vm9, %v3039_v24  ;;  %2556 = vmatprep.subr.bf16.mxu0 %v2555_v34  ;;  %v1509_v49 = vpop.permute.xlu1 %1508 }
 0x165   : > { %v1524_v36 = vsel %vm476_vm3, %v3256_v5, %v1509_v49  ;;  %v3330_v41 = vpop.permute.xlu0 %1452  ;;  %2558 = vmatpush1.bf16.msra.mxu0 %v2557_v35  ;;  %2004 = vmatprep.mubr.f32.mxu0 %v2647_v13 }
 0x166   : > { %1542 = vst [vmem:[#allocation2 + $0xa0] sm:$0xf] %v1524_v36  ;;  %v1465_v42 = vsel %vm413_vm1, %v1451_v22, %v3330_v41  ;;  %v1802_v52 = vld [vmem:[#allocation2 + $0x28] sm:$0xff] }
 0x167   : > { %1483 = vst [vmem:[#allocation2 + $0x70] sm:$0xf0] %v1465_v42 }
 0x168   : > { %v1571_v46 = vpop.permute.xlu1 %1570 }
 0x169   : > { %v1586_v47 = vsel %vm539_vm4, %v3264_v37, %v1571_v46  ;;  %v1511_v43 = vpop.permute.xlu0 %1510  ;;  %v1810_v60 = vld [vmem:[#allocation2 + $0x68] sm:$0xff] }
 0x16a   : > { %1604 = vst [vmem:[#allocation2 + $0xa0] sm:$0xf0] %v1586_v47  ;;  %v1525_v48 = vsel %vm476_vm3, %v1509_v49, %v1511_v43  ;;  %v2565_v57 = vpack.c.bf16 %v1810_v60, %v1801_v3 }
 0x16b   : > { %1543 = vst [vmem:[#allocation2 + $0xa8] sm:$0xf] %v1525_v48 }
 0x16c   : > { %v1633_v5 = vpop.permute.xlu1 %1632 }
 0x16d   : > { %v1648_v51 = vsel %vm602_vm5, %v3275_v50, %v1633_v5  ;;  %v1573_v26 = vpop.permute.xlu0 %1572 }
 0x16e   : > { %1666 = vst [vmem:[#allocation2 + $0xe8] sm:$0xf] %v1648_v51  ;;  %v1587_v27 = vsel %vm539_vm4, %v1571_v46, %v1573_v26  ;;  %v1811_v7 = vld [vmem:[#allocation2 + $0x70] sm:$0xff] }
 0x16f   : > { %1605 = vst [vmem:[#allocation2 + $0xa8] sm:$0xf0] %v1587_v27  ;;  %v2563_v19 = vpack.c.bf16 %v1811_v7, %v1802_v52 }
 0x170   : > { %v1695_v39 = vpop.permute.xlu1 %1694 }
 0x171   : > { %v1710_v2 = vsel %vm665_vm6, %v3282_v16, %v1695_v39  ;;  %v1635_v10 = vpop.permute.xlu0 %1634  ;;  %v1817_v33 = vld [vmem:[#allocation2 + $0xa0] sm:$0xff] }
 0x172   : > { %1728 = vst [vmem:[#allocation2 + $0xe8] sm:$0xf0] %v1710_v2  ;;  %v1649_v37 = vsel %vm602_vm5, %v1633_v5, %v1635_v10 }
 0x173   : > { %1667 = vst [vmem:[#allocation2 + $0xf0] sm:$0xf] %v1649_v37 }
 0x174   : > { %v1753_v55 = vpop.permute.xlu1 %1752 }
 0x175   : > { %v1697_v12 = vpop.permute.xlu0 %1696 }
 0x176   : > { %v1711_v56 = vsel %vm665_vm6, %v1695_v39, %v1697_v12  ;;  %v1818_v0 = vld [vmem:[#allocation2 + $0xa8] sm:$0xff]  ;;  %v152_v39 = vlaneseq }
 0x177   : > { %1729 = vst [vmem:[#allocation2 + $0xf0] sm:$0xf0] %v1711_v56 }
 0x178   : > { %v1751_v50 = vpop.permute.xlu1 %1750 }
 0x179   : > { %v1770_v58 = vsel %vm728_vm7, %v1751_v50, %v1753_v55  ;;  %v3346_v28 = vpop.permute.xlu0 %1754  ;;  %v1826_v61 = vld [vmem:[#allocation2 + $0xe8] sm:$0xff] }
 0x17a   : > { %1788 = vst [vmem:[#allocation2 + $0x120] sm:$0xf] %v1770_v58  ;;  %v1771_v45 = vsel %vm728_vm7, %v1753_v55, %v3346_v28  ;;  %v2561_v6 = vpack.c.bf16 %v1826_v61, %v1817_v33 }
 0x17b   : > { %1789 = vst [vmem:[#allocation2 + $0x128] sm:$0xf] %v1771_v45 }
 0x17c   : > { %v3350_v16 = vpop.permute.xlu1 %1514 }
 0x17d   : > { %v1513_v40 = vpop.permute.xlu0 %1512 }
 0x17e   : > { %v1526_v44 = vsel %vm476_vm3, %v1511_v43, %v1513_v40  ;;  %v1527_v63 = vsel %vm476_vm3, %v1513_v40, %v3350_v16  ;;  %v1827_v53 = vld [vmem:[#allocation2 + $0xf0] sm:$0xff] }
 0x17f   : > { %1544 = vst [vmem:[#allocation2 + $0xb0] sm:$0xf] %v1526_v44  ;;  %1545 = vst [vmem:[#allocation2 + $0xb8] sm:$0xf] %v1527_v63  ;;  %v2559_v1 = vpack.c.bf16 %v1827_v53, %v1818_v0 }
 0x180   : > { %v3355_v4 = vpop.permute.xlu1 %1576 }
 0x181   : > { %v1575_v8 = vpop.permute.xlu0 %1574  ;;  %2560 = vmatprep.subr.bf16.mxu0 %v2559_v1  ;;  %v1833_v14 = vld [vmem:[#allocation2 + $0x120] sm:$0xf] }
 0x182   : > { %v1588_v15 = vsel %vm539_vm4, %v1573_v26, %v1575_v8  ;;  %v1589_v17 = vsel %vm539_vm4, %v1575_v8, %v3355_v4  ;;  %2562 = vmatpush1.bf16.msra.mxu0 %v2561_v6  ;;  %v1834_v18 = vld [vmem:[#allocation2 + $0x128] sm:$0xf] }
 0x183   : > { %1606 = vst [vmem:[#allocation2 + $0xb0] sm:$0xf0] %v1588_v15  ;;  %1607 = vst [vmem:[#allocation2 + $0xb8] sm:$0xf0] %v1589_v17  ;;  %2446 = vmatprep.subr.msk.mxu1 %vm805_vm8, %v1834_v18 }
 0x184   : > { %2447 = vmatpush1.msk.msra.mxu1 %vm805_vm8, %v1833_v14  ;;  %v3362_v62 = vpop.permute.xlu1 %1638 }
 0x185   : > { %v1637_v20 = vpop.permute.xlu0 %1636  ;;  %2564 = vmatprep.subr.bf16.mxu1 %v2563_v19  ;;  %2448 = vmatmul.mubr.msk.f32.vlgmr.msra.gmra.mrb[4].mxu1 %vm801_vm9, %v3039_v24 }
 0x186   : > { %v1650_v54 = vsel %vm602_vm5, %v1635_v10, %v1637_v20  ;;  %v1651_v11 = vsel %vm602_vm5, %v1637_v20, %v3362_v62  ;;  %2566 = vmatpush1.bf16.msra.mxu1 %v2565_v57  ;;  %2075 = vmatprep.mubr.f32.mxu1 %v2647_v13 }
 0x187   : > { %1668 = vst [vmem:[#allocation2 + $0xf8] sm:$0xf] %v1650_v54  ;;  %1669 = vst [vmem:[#allocation2 + $0x100] sm:$0xf] %v1651_v11 }
 0x188   : > { %v3370_v23 = vpop.permute.xlu1 %1700 }
 0x189   : > { %v1699_v22 = vpop.permute.xlu0 %1698 }
 0x18a   : > { %v1712_v9 = vsel %vm665_vm6, %v1697_v12, %v1699_v22  ;;  %v1713_v32 = vsel %vm665_vm6, %v1699_v22, %v3370_v23  ;;  %v1820_v49 = vld [vmem:[#allocation2 + $0xb8] sm:$0xff]  ;;  %v1819_v47 = vld [vmem:[#allocation2 + $0xb0] sm:$0xff]  ;;  %v3398_v12 = vand.u32 127, %v152_v39 }
 0x18b   : > { %1730 = vst [vmem:[#allocation2 + $0xf8] sm:$0xf0] %v1712_v9  ;;  %1731 = vst [vmem:[#allocation2 + $0x100] sm:$0xf0] %v1713_v32 }
 0x18c   : > { %v3375_v30 = vpop.permute.xlu1 %1332  ;;  %v154_v45 = vadd.s32 128, %v3398_v12  ;;  %v162_v6 = vmul.u32 7282, %v3398_v12 }
 0x18d   : > { %v1331_v38 = vpop.permute.xlu0 %1330 }
 0x18e   : > { %v1342_v31 = vsel %vm287_vm2, %v3316_v21, %v1331_v38  ;;  %v1343_v34 = vsel %vm287_vm2, %v1331_v38, %v3375_v30  ;;  %v163_v14 = vmul.u32 7282, %v154_v45  ;;  %v171_v17 = vshra.s32 %v162_v6, 18 }
 0x18f   : > { %1360 = vst [vmem:[#allocation2 + $0x30] sm:$0xf0] %v1342_v31  ;;  %1361 = vst [vmem:[#allocation2 + $0x38] sm:$0xf0] %v1343_v34 }
 0x190   : > { %v3381_v29 = vpop.permute.xlu1 %1394  ;;  %v172_v52 = vshra.s32 %v163_v14, 18 }
 0x191   : > { %v1393_v35 = vpop.permute.xlu0 %1392 }
 0x192   : > { %v1404_v36 = vsel %vm350_vm0, %v3321_v25, %v1393_v35  ;;  %v1405_v42 = vsel %vm350_vm0, %v1393_v35, %v3381_v29  ;;  %v1829_v46 = vld [vmem:[#allocation2 + $0x100] sm:$0xff]  ;;  %v1828_v43 = vld [vmem:[#allocation2 + $0xf8] sm:$0xff]  ;;  %v181_v20 = vmul.u32 36, %v172_v52 }
 0x193   : > { %1422 = vst [vmem:[#allocation2 + $0x78] sm:$0xf] %v1404_v36  ;;  %1423 = vst [vmem:[#allocation2 + $0x80] sm:$0xf] %v1405_v42  ;;  %v2567_v21 = vpack.c.bf16 %v1829_v46, %v1820_v49  ;;  %v2569_v48 = vpack.c.bf16 %v1828_v43, %v1819_v47 }
 0x194   : > { %v3387_v5 = vpop.permute.xlu1 %1456  ;;  %v190_v38 = vsub.s32 %v154_v45, %v181_v20  ;;  %v158_v20 = vadd.s32 640, %v3398_v12 }
 0x195   : > { %v1455_v51 = vpop.permute.xlu0 %1454  ;;  %2568 = vmatprep.subr.bf16.mxu1 %v2567_v21 }
 0x196   : > { %v1466_v26 = vsel %vm413_vm1, %v3330_v41, %v1455_v51  ;;  %v1467_v25 = vsel %vm413_vm1, %v1455_v51, %v3387_v5  ;;  %2570 = vmatpush1.bf16.msra.mxu1 %v2569_v48  ;;  %v1804_v53 = vld [vmem:[#allocation2 + $0x38] sm:$0xff]  ;;  %v1803_v33 = vld [vmem:[#allocation2 + $0x30] sm:$0xff]  ;;  %vm199_vm12 = vcmp.lt.s32.totalorder %v190_v38, 32 }
 0x197   : > { %1484 = vst [vmem:[#allocation2 + $0x78] sm:$0xf0] %v1466_v26  ;;  %1485 = vst [vmem:[#allocation2 + $0x80] sm:$0xf0] %v1467_v25  ;;  %v3442_v25 = vsel %vm199_vm12, 1.0, %v2647_v13 }
 0x198   : > { %v1759_v27 = vpop.permute.xlu1 %1758 }
 0x199   : > { %v1757_v2 = vpop.permute.xlu0 %1756 }
 0x19a   : > { %v1772_v10 = vsel %vm728_vm7, %v3346_v28, %v1757_v2  ;;  %v1773_v37 = vsel %vm728_vm7, %v1757_v2, %v1759_v27 }
 0x19b   : > { %1790 = vst [vmem:[#allocation2 + $0x130] sm:$0xf] %v1772_v10  ;;  %1791 = vst [vmem:[#allocation2 + $0x138] sm:$0xf] %v1773_v37  ;;  %v2630_v10 = vld [vmem:[%s3701_s1] sm:$0xff] }
 0x19c   : > { %v3396_v55 = vpop.permute.xlu1 %1518 }
 0x19d   : > { %v1517_v41 = vpop.permute.xlu0 %1516 }
 0x19e   : > { %v1528_v56 = vsel %vm476_vm3, %v3350_v16, %v1517_v41  ;;  %v1529_v50 = vsel %vm476_vm3, %v1517_v41, %v3396_v55  ;;  %v1813_v28 = vld [vmem:[#allocation2 + $0x80] sm:$0xff]  ;;  %v1812_v61 = vld [vmem:[#allocation2 + $0x78] sm:$0xff] }
 0x19f   : > { %1546 = vst [vmem:[#allocation2 + $0xc0] sm:$0xf] %v1528_v56  ;;  %1547 = vst [vmem:[#allocation2 + $0xc8] sm:$0xf] %v1529_v50  ;;  %v2571_v1 = vpack.c.bf16 %v1813_v28, %v1804_v53  ;;  %v2573_v8 = vpack.c.bf16 %v1812_v61, %v1803_v33 }
 0x1a0   : > { %v3404_v58 = vpop.permute.xlu1 %1580 }
 0x1a1   : > { %v1579_v40 = vpop.permute.xlu0 %1578 }
 0x1a2   : > { %v1590_v44 = vsel %vm539_vm4, %v3355_v4, %v1579_v40  ;;  %v1591_v63 = vsel %vm539_vm4, %v1579_v40, %v3404_v58  ;;  %v1836_v0 = vld [vmem:[#allocation2 + $0x138] sm:$0xf]  ;;  %v1835_v16 = vld [vmem:[#allocation2 + $0x130] sm:$0xf] }
 0x1a3   : > { %1608 = vst [vmem:[#allocation2 + $0xc0] sm:$0xf0] %v1590_v44  ;;  %1609 = vst [vmem:[#allocation2 + $0xc8] sm:$0xf0] %v1591_v63  ;;  %2449 = vmatprep.subr.msk.mxu0 %vm805_vm8, %v1836_v0 }
 0x1a4   : > { %2450 = vmatpush1.msk.msra.mxu0 %vm805_vm8, %v1835_v16  ;;  %v1643_v7 = vpop.permute.xlu1 %1642  ;;  %v156_v16 = vadd.s32 384, %v3398_v12 }
 0x1a5   : > { %v1641_v4 = vpop.permute.xlu0 %1640  ;;  %2572 = vmatprep.subr.bf16.mxu0 %v2571_v1  ;;  %2451 = vmatmul.mubr.msk.f32.vlgmr.msra.gmra.mrb[6].mxu0 %vm801_vm9, %v3039_v24 }
 0x1a6   : > { %v1652_v60 = vsel %vm602_vm5, %v3362_v62, %v1641_v4  ;;  %v1653_v15 = vsel %vm602_vm5, %v1641_v4, %v1643_v7  ;;  %2574 = vmatpush1.bf16.msra.mxu0 %v2573_v8  ;;  %2146 = vmatprep.mubr.f32.mxu0 %v2647_v13  ;;  %v180_v62 = vmul.u32 36, %v171_v17  ;;  %v165_v8 = vmul.u32 7282, %v156_v16 }
 0x1a7   : > { %1670 = vst [vmem:[#allocation2 + $0x108] sm:$0xf] %v1652_v60  ;;  %1671 = vst [vmem:[#allocation2 + $0x110] sm:$0xf] %v1653_v15 }
 0x1a8   : > { %v3420_v18 = vpop.permute.xlu1 %1704  ;;  %v189_v9 = vsub.s32 %v3398_v12, %v180_v62  ;;  %v174_v17 = vshra.s32 %v165_v8, 18 }
 0x1a9   : > { %v1703_v19 = vpop.permute.xlu0 %1702 }
 0x1aa   : > { %v1714_v3 = vsel %vm665_vm6, %v3370_v23, %v1703_v19  ;;  %v1715_v24 = vsel %vm665_vm6, %v1703_v19, %v3420_v18  ;;  %v1822_v34 = vld [vmem:[#allocation2 + $0xc8] sm:$0xff]  ;;  %v1821_v36 = vld [vmem:[#allocation2 + $0xc0] sm:$0xff]  ;;  %vm198_vm11 = vcmp.lt.s32.totalorder %v189_v9, 32 }
 0x1ab   : > { %1732 = vst [vmem:[#allocation2 + $0x108] sm:$0xf0] %v1714_v3  ;;  %1733 = vst [vmem:[#allocation2 + $0x110] sm:$0xf0] %v1715_v24  ;;  %v3438_v26 = vsel %vm198_vm11, 1.0, %v2647_v13  ;;  %v183_v3 = vmul.u32 36, %v174_v17 }
 0x1ac   : > { %v1763_v57 = vpop.permute.xlu1 %1762 }
 0x1ad   : > { %v1761_v54 = vpop.permute.xlu0 %1760  ;;  %v192_v62 = vsub.s32 %v156_v16, %v183_v3 }
 0x1ae   : > { %v1774_v11 = vsel %vm728_vm7, %v1759_v27, %v1761_v54  ;;  %v1775_v22 = vsel %vm728_vm7, %v1761_v54, %v1763_v57 }
 0x1af   : > { %1792 = vst [vmem:[#allocation2 + $0x140] sm:$0xf] %v1774_v11  ;;  %1793 = vst [vmem:[#allocation2 + $0x148] sm:$0xf] %v1775_v22  ;;  %vm201_vm14 = vcmp.lt.s32.totalorder %v192_v62, 32 }
 0x1b0   : > { %v1397_v32 = vpop.permute.xlu1 %1396  ;;  %v3483_v11 = vsel %vm201_vm14, 1.0, %v2647_v13 }
 0x1b1   : > { %v1406_v23 = vsel %vm350_vm0, %v3381_v29, %v1397_v32  ;;  %v1335_v31 = vpop.permute.xlu0 %1334  ;;  %v167_v32 = vmul.u32 7282, %v158_v20 }
 0x1b2   : > { %1424 = vst [vmem:[#allocation2 + $0x88] sm:$0xf] %v1406_v23  ;;  %v1344_v35 = vsel %vm287_vm2, %v3375_v30, %v1335_v31  ;;  %v1831_v49 = vld [vmem:[#allocation2 + $0x110] sm:$0xff]  ;;  %v1830_v42 = vld [vmem:[#allocation2 + $0x108] sm:$0xff] }
 0x1b3   : > { %1362 = vst [vmem:[#allocation2 + $0x40] sm:$0xf0] %v1344_v35  ;;  %v2575_v46 = vpack.c.bf16 %v1831_v49, %v1822_v34  ;;  %v2577_v47 = vpack.c.bf16 %v1830_v42, %v1821_v36  ;;  %v176_v49 = vshra.s32 %v167_v32, 18 }
 0x1b4   : > { %v1521_v43 = vpop.permute.xlu1 %1520 }
 0x1b5   : > { %v1530_v21 = vsel %vm476_vm3, %v3396_v55, %v1521_v43  ;;  %v1459_v48 = vpop.permute.xlu0 %1458  ;;  %2576 = vmatprep.subr.bf16.mxu0 %v2575_v46  ;;  %v159_v46 = vadd.s32 768, %v3398_v12  ;;  %v160_v43 = vadd.s32 896, %v3398_v12 }
 0x1b6   : > { %1548 = vst [vmem:[#allocation2 + $0xd0] sm:$0xf] %v1530_v21  ;;  %v1468_v29 = vsel %vm413_vm1, %v3387_v5, %v1459_v48  ;;  %2578 = vmatpush1.bf16.msra.mxu0 %v2577_v47  ;;  %v1838_v30 = vld [vmem:[#allocation2 + $0x148] sm:$0xf]  ;;  %v1837_v51 = vld [vmem:[#allocation2 + $0x140] sm:$0xf] }
 0x1b7   : > { %1486 = vst [vmem:[#allocation2 + $0x88] sm:$0xf0] %v1468_v29  ;;  %2452 = vmatprep.subr.msk.mxu1 %vm805_vm8, %v1838_v30  ;;  %v185_v47 = vmul.u32 36, %v176_v49  ;;  %v168_v48 = vmul.u32 7282, %v159_v46 }
 0x1b8   : > { %2453 = vmatpush1.msk.msra.mxu1 %vm805_vm8, %v1837_v51  ;;  %v1645_v27 = vpop.permute.xlu1 %1644  ;;  %v3445_v39 = vpop.f32.mrb[0].mxu0  ;;  %v169_v30 = vmul.u32 7282, %v160_v43 }
 0x1b9   : > { %v1654_v2 = vsel %vm602_vm5, %v1643_v7, %v1645_v27  ;;  %v1583_v5 = vpop.permute.xlu0 %1582  ;;  %2579 = vmatprep.subr.bf16.mxu1 %v2648_v59  ;;  %2454 = vmatmul.mubr.msk.f32.vlgmr.msra.gmra.mrb[6].mxu1 %vm801_vm9, %v2630_v10  ;;  %v1187_v37 = vmul.f32 %v3438_v26, %v3445_v39  ;;  %v3455_v55 = vpop.f32.mrb[1].mxu0  ;;  %v194_v29 = vsub.s32 %v158_v20, %v185_v47  ;;  %v177_v51 = vshra.s32 %v168_v48, 18 }
 0x1ba   : > { %1672 = vst [vmem:[#allocation2 + $0x118] sm:$0xf] %v1654_v2  ;;  %v1592_v41 = vsel %vm539_vm4, %v3404_v58, %v1583_v5  ;;  %2506 = vmatprep.mubr.msk.f32.mxu1 %vm2649_vm10, %v2647_v13  ;;  %v1188_v56 = vmul.f32 %v3442_v25, %v3455_v55  ;;  %v1805_v44 = vld [vmem:[#allocation2 + $0x40] sm:$0xff]  ;;  %v155_v58 = vadd.s32 256, %v3398_v12  ;;  %v178_v27 = vshra.s32 %v169_v30, 18 }
 0x1bb   : > { %1610 = vst [vmem:[#allocation2 + $0xd0] sm:$0xf0] %v1592_v41  ;;  %vm203_vm0 = vcmp.lt.s32.totalorder %v194_v29, 32 }
 0x1bc   : > { %v1765_v50 = vpop.permute.xlu1 %1764  ;;  %v1196_v28 = vadd.f32 %v1188_v56, %v1187_v37  ;;  %v164_v7 = vmul.u32 7282, %v155_v58  ;;  %v3499_v5 = vsel %vm203_vm0, 1.0, %v2647_v13  ;;  %v187_v41 = vmul.u32 36, %v178_v27 }
 0x1bd   : > { %v1776_v45 = vsel %vm728_vm7, %v1763_v57, %v1765_v50  ;;  %v1707_v40 = vpop.permute.xlu0 %1706  ;;  %v157_v57 = vadd.s32 512, %v3398_v12 }
 0x1be   : > { %1794 = vst [vmem:[#allocation2 + $0x150] sm:$0xf] %v1776_v45  ;;  %v1716_v61 = vsel %vm665_vm6, %v3420_v18, %v1707_v40  ;;  %v1814_v63 = vld [vmem:[#allocation2 + $0x88] sm:$0xff]  ;;  %v173_v60 = vshra.s32 %v164_v7, 18  ;;  %v161_v7 = vadd.s32 1024, %v3398_v12 }
 0x1bf   : > { %1734 = vst [vmem:[#allocation2 + $0x118] sm:$0xf0] %v1716_v61  ;;  %v2580_v0 = vpack.c.bf16 %v1814_v63, %v1805_v44  ;;  %v166_v22 = vmul.u32 7282, %v157_v57  ;;  %v196_v61 = vsub.s32 %v160_v43, %v187_v41 }
 0x1c0   : > { %v1769_v53 = vpop.permute.xlu1 %1768  ;;  %v182_v52 = vmul.u32 36, %v173_v60  ;;  %v170_v8 = vmul.u32 7282, %v161_v7 }
 0x1c1   : > { %v1767_v1 = vpop.permute.xlu0 %1766  ;;  %2581 = vmatpush3.bf16.msra.mxu1 %v2580_v0  ;;  %v175_v35 = vshra.s32 %v166_v22, 18  ;;  %vm205_vm2 = vcmp.lt.s32.totalorder %v196_v61, 32 }
 0x1c2   : > { %v1777_v33 = vsel %vm728_vm7, %v1765_v50, %v1767_v1  ;;  %v1778_v6 = vsel %vm728_vm7, %v1767_v1, %v1769_v53  ;;  %2582 = vmatprep.subr.bf16.mxu1 %v2648_v59  ;;  %v1823_v14 = vld [vmem:[#allocation2 + $0xd0] sm:$0xff]  ;;  %v191_v24 = vsub.s32 %v155_v58, %v182_v52  ;;  %v3513_v58 = vsel %vm205_vm2, 1.0, %v2647_v13 }
 0x1c3   : > { %1795 = vst [vmem:[#allocation2 + $0x158] sm:$0xf] %v1777_v33  ;;  %1796 = vst [vmem:[#allocation2 + $0x160] sm:$0xf] %v1778_v6  ;;  %v184_v42 = vmul.u32 36, %v175_v35 }
 0x1c4   : > { %vm200_vm13 = vcmp.lt.s32.totalorder %v191_v24, 32 }
 0x1c5   : > { %v1839_v19 = vld [vmem:[#allocation2 + $0x150] sm:$0xf]  ;;  %v3480_v54 = vsel %vm200_vm13, 1.0, %v2647_v13  ;;  %v193_v21 = vsub.s32 %v157_v57, %v184_v42 }
 0x1c6   : > { %v1832_v4 = vld [vmem:[#allocation2 + $0x118] sm:$0xff] }
 0x1c7   : > { %v2583_v15 = vpack.c.bf16 %v1832_v4, %v1823_v14  ;;  %vm202_vm15 = vcmp.lt.s32.totalorder %v193_v21, 32  ;;  %v179_v14 = vshra.s32 %v170_v8, 18 }
 0x1c8   : > { %v3496_v2 = vsel %vm202_vm15, 1.0, %v2647_v13 }
 0x1c9   : > { %2584 = vmatpush3.bf16.msra.mxu1 %v2583_v15  ;;  %v188_v4 = vmul.u32 36, %v179_v14 }
 0x1ca   : > { %v1840_v18 = vld [vmem:[#allocation2 + $0x158] sm:$0xf]  ;;  %2504 = vmatprep.subr.mxu1 %v2647_v13  ;;  %v1841_v59 = vld [vmem:[#allocation2 + $0x160] sm:$0xf] }
 0x1cb   : > { %2455 = vmatprep.subr.msk.mxu0 %vm805_vm8, %v1840_v18  ;;  %v197_v60 = vsub.s32 %v161_v7, %v188_v4 }
 0x1cc   : > { %2456 = vmatpush1.msk.msra.mxu0 %vm805_vm8, %v1839_v19 }
 0x1cd   : > { %2457 = vmatmul.mubr.msk.f32.vlgmr.msra.gmra.mrb[8].mxu0 %vm801_vm9, %v2630_v10  ;;  %2505 = vmatpush3.msk.msra.mxu1 %vm805_vm8, %v1841_v59  ;;  %vm206_vm3 = vcmp.lt.s32.totalorder %v197_v60, 32 }
 0x1ce   : > { %2507 = vmatmul.mubr.msk.f32.vlgmr.msra.gmra.mrb[8].mxu1 %vm801_vm9, %v2630_v10  ;;  %v186_v10 = vmul.u32 36, %v177_v51  ;;  %v3525_v15 = vsel %vm206_vm3, 1.0, %v2647_v13 }
 0x1d0   : > { %v195_v40 = vsub.s32 %v159_v46, %v186_v10 }
 0x1d2   : > { %vm204_vm1 = vcmp.lt.s32.totalorder %v195_v40, 32 }
 0x1d3   : > { %v3510_v63 = vsel %vm204_vm1, 1.0, %v2647_v13 }
 0x1d7   : > { %v3485_v9 = vpop.f32.mrb[0].mxu1 }
 0x1d8   : > { %v1189_v38 = vmul.f32 %v3480_v54, %v3485_v9  ;;  %v3489_v23 = vpop.f32.mrb[1].mxu1 }
 0x1d9   : > { %v1190_v31 = vmul.f32 %v3483_v11, %v3489_v23 }
 0x1da   : > { %v1197_v34 = vadd.f32 %v1196_v28, %v1189_v38 }
 0x1dc   : > { %v1198_v36 = vadd.f32 %v1197_v34, %v1190_v31 }
 0x1eb   : > { %v3501_v37 = vpop.f32.mrb[2].mxu0 }
 0x1ec   : > { %v1191_v56 = vmul.f32 %v3496_v2, %v3501_v37  ;;  %v3505_v50 = vpop.f32.mrb[3].mxu0 }
 0x1ed   : > { %v1192_v28 = vmul.f32 %v3499_v5, %v3505_v50 }
 0x1ee   : > { %v1199_v45 = vadd.f32 %v1198_v36, %v1191_v56 }
 0x1f0   : > { %v1200_v44 = vadd.f32 %v1199_v45, %v1192_v28 }
 0x1f7   : > { %v3515_v0 = vpop.f32.mrb[2].mxu1 }
 0x1f8   : > { %v1193_v16 = vmul.f32 %v3510_v63, %v3515_v0  ;;  %v3519_v53 = vpop.f32.mrb[3].mxu1 }
 0x1f9   : > { %v1194_v1 = vmul.f32 %v3513_v58, %v3519_v53 }
 0x1fa   : > { %v1201_v33 = vadd.f32 %v1200_v44, %v1193_v16 }
 0x1fc   : > { %v1202_v6 = vadd.f32 %v1201_v33, %v1194_v1 }
 0x237   : > { %v3527_v17 = vpop.f32.mrb[4].mxu0 }
 0x238   : > { %v1195_v18 = vmul.f32 %v3525_v15, %v3527_v17  ;;  %v2495_v52 = vpop.f32.mrb[5].mxu0 }
 0x23a   : > { %v1203_v19 = vadd.f32 %v1202_v6, %v1195_v18 }
 0x23c   : > { %1204 = vadd.xlane.f32.xlu0 %v1203_v19 }
 0x258   : > { %v3531_v3 = vpop.f32.mrb[4].mxu1 }
 0x259   : > { %v2223_v12 = vmul.f32 %v3438_v26, %v3531_v3  ;;  %v3535_v59 = vpop.f32.mrb[5].mxu1 }
 0x25a   : > { %v2224_v24 = vmul.f32 %v3442_v25, %v3535_v59 }
 0x25c   : > { %v2232_v13 = vadd.f32 %v2224_v24, %v2223_v12 }
 0x278   : > { %v3539_v62 = vpop.f32.mrb[6].mxu0 }
 0x279   : > { %v2225_v57 = vmul.f32 %v3480_v54, %v3539_v62  ;;  %v3543_v20 = vpop.f32.mrb[7].mxu0 }
 0x27a   : > { %v2226_v22 = vmul.f32 %v3483_v11, %v3543_v20 }
 0x27b   : > { %v2233_v32 = vadd.f32 %v2232_v13, %v2225_v57 }
 0x27d   : > { %v2234_v38 = vadd.f32 %v2233_v32, %v2226_v22 }
 0x28c   : > { %v3547_v31 = vpop.f32.mrb[6].mxu1 }
 0x28d   : > { %v2227_v34 = vmul.f32 %v3496_v2, %v3547_v31  ;;  %v3551_v35 = vpop.f32.mrb[7].mxu1 }
 0x28e   : > { %v2228_v49 = vmul.f32 %v3499_v5, %v3551_v35 }
 0x28f   : > { %v2235_v36 = vadd.f32 %v2234_v38, %v2227_v34 }
 0x291   : > { %v2236_v42 = vadd.f32 %v2235_v36, %v2228_v49 }
 0x2a0   : > { %v3555_v46 = vpop.f32.mrb[8].mxu0 }
 0x2a1   : > { %v2229_v47 = vmul.f32 %v3510_v63, %v3555_v46  ;;  %v3559_v43 = vpop.f32.mrb[9].mxu0  ;;  %v3561_v21 = vpop.f32.mrb[8].mxu1 }
 0x2a2   : > { %v2230_v48 = vmul.f32 %v3513_v58, %v3559_v43  ;;  %v2508_v29 = vpop.f32.mrb[9].mxu1  ;;  %v2231_v51 = vmul.f32 %v3525_v15, %v3561_v21 }
 0x2a3   : > { %v2237_v30 = vadd.f32 %v2236_v42, %v2229_v47 }
 0x2a5   : > { %v2238_v27 = vadd.f32 %v2237_v30, %v2230_v48 }
 0x2a7   : > { %v2239_v10 = vadd.f32 %v2238_v27, %v2231_v51 }
 0x2a9   : > { %2240 = vadd.xlane.f32.xlu1 %v2239_v10 }
 0x2c9   : > { %v1205_v41 = vpop.xlane.xlu0 %1204 }
 0x2ca   : > { %v1206_v56 = vmul.f32 0.0009765625, %v1205_v41 }
 0x2cc   : > { %v1207_v28 = vsub.f32 %v3445_v39, %v1206_v56  ;;  %v1208_v45 = vsub.f32 %v3455_v55, %v1206_v56  ;;  %v1209_v40 = vsub.f32 %v3485_v9, %v1206_v56  ;;  %v1210_v61 = vsub.f32 %v3489_v23, %v1206_v56 }
 0x2cd   : > { %v1211_v44 = vsub.f32 %v3501_v37, %v1206_v56  ;;  %v1212_v6 = vsub.f32 %v3505_v50, %v1206_v56  ;;  %v1213_v23 = vsub.f32 %v3515_v0, %v1206_v56  ;;  %v1214_v50 = vsub.f32 %v3519_v53, %v1206_v56 }
 0x2ce   : > { %v3573_v16 = vmul.f32 %v3438_v26, %v1207_v28  ;;  %v3576_v1 = vmul.f32 %v3442_v25, %v1208_v45  ;;  %v3579_v33 = vmul.f32 %v3480_v54, %v1209_v40  ;;  %v3583_v39 = vmul.f32 %v3483_v11, %v1210_v61 }
 0x2cf   : > { %v3591_v37 = vmul.f32 %v3496_v2, %v1211_v44  ;;  %v3597_v14 = vmul.f32 %v3499_v5, %v1212_v6  ;;  %v1215_v18 = vsub.f32 %v3527_v17, %v1206_v56  ;;  %v3603_v0 = vmul.f32 %v3510_v63, %v1213_v23 }
 0x2d0   : > { %v1225_v55 = vmul.f32 %v3573_v16, %v3573_v16  ;;  %v1226_v9 = vmul.f32 %v3576_v1, %v3576_v1  ;;  %v1227_v7 = vmul.f32 %v3579_v33, %v3579_v33  ;;  %v1228_v4 = vmul.f32 %v3583_v39, %v3583_v39 }
 0x2d1   : > { %v1229_v52 = vmul.f32 %v3591_v37, %v3591_v37  ;;  %v3608_v12 = vmul.f32 %v3513_v58, %v1214_v50  ;;  %v1230_v53 = vmul.f32 %v3597_v14, %v3597_v14  ;;  %v1224_v13 = vmul.f32 %v3525_v15, %v1215_v18 }
 0x2d2   : > { %v1234_v8 = vadd.f32 %v1226_v9, %v1225_v55  ;;  %v1231_v57 = vmul.f32 %v3603_v0, %v3603_v0 }
 0x2d3   : > { %v1232_v22 = vmul.f32 %v3608_v12, %v3608_v12  ;;  %v1233_v38 = vmul.f32 %v1224_v13, %v1224_v13 }
 0x2d4   : > { %v1235_v60 = vadd.f32 %v1234_v8, %v1227_v7 }
 0x2d6   : > { %v1236_v19 = vadd.f32 %v1235_v60, %v1228_v4 }
 0x2d8   : > { %v1237_v24 = vadd.f32 %v1236_v19, %v1229_v52 }
 0x2da   : > { %v1238_v17 = vadd.f32 %v1237_v24, %v1230_v53 }
 0x2dc   : > { %v1239_v32 = vadd.f32 %v1238_v17, %v1231_v57 }
 0x2de   : > { %v1240_v34 = vadd.f32 %v1239_v32, %v1232_v22 }
 0x2e0   : > { %v1241_v49 = vadd.f32 %v1240_v34, %v1233_v38 }
 0x2e2   : > { %1242 = vadd.xlane.f32.xlu0 %v1241_v49 }
 0x336   : > { %v2241_v36 = vpop.xlane.xlu1 %2240 }
 0x337   : > { %v2242_v42 = vmul.f32 0.0009765625, %v2241_v36 }
 0x339   : > { %v2243_v47 = vsub.f32 %v3531_v3, %v2242_v42  ;;  %v2244_v48 = vsub.f32 %v3535_v59, %v2242_v42  ;;  %v2245_v29 = vsub.f32 %v3539_v62, %v2242_v42  ;;  %v2246_v30 = vsub.f32 %v3543_v20, %v2242_v42 }
 0x33a   : > { %v2247_v51 = vsub.f32 %v3547_v31, %v2242_v42  ;;  %v2248_v56 = vsub.f32 %v3551_v35, %v2242_v42  ;;  %v2250_v31 = vsub.f32 %v3559_v43, %v2242_v42  ;;  %v2251_v45 = vsub.f32 %v3561_v21, %v2242_v42 }
 0x33b   : > { %v3623_v27 = vmul.f32 %v3438_v26, %v2243_v47  ;;  %v3626_v10 = vmul.f32 %v3442_v25, %v2244_v48  ;;  %v3629_v41 = vmul.f32 %v3480_v54, %v2245_v29  ;;  %v3633_v3 = vmul.f32 %v3483_v11, %v2246_v30 }
 0x33c   : > { %v2249_v26 = vsub.f32 %v3555_v46, %v2242_v42  ;;  %v3641_v20 = vmul.f32 %v3496_v2, %v2247_v51  ;;  %v3647_v11 = vmul.f32 %v3499_v5, %v2248_v56  ;;  %v2259_v61 = vmul.f32 %v3513_v58, %v2250_v31 }
 0x33d   : > { %v2261_v59 = vmul.f32 %v3623_v27, %v3623_v27  ;;  %v2262_v62 = vmul.f32 %v3626_v10, %v3626_v10  ;;  %v2263_v25 = vmul.f32 %v3629_v41, %v3629_v41  ;;  %v2264_v35 = vmul.f32 %v3633_v3, %v3633_v3 }
 0x33e   : > { %v2258_v46 = vmul.f32 %v3510_v63, %v2249_v26  ;;  %v2265_v2 = vmul.f32 %v3641_v20, %v3641_v20  ;;  %v2266_v43 = vmul.f32 %v3647_v11, %v3647_v11  ;;  %v2260_v44 = vmul.f32 %v3525_v15, %v2251_v45 }
 0x33f   : > { %v2270_v54 = vadd.f32 %v2262_v62, %v2261_v59  ;;  %v2268_v9 = vmul.f32 %v2259_v61, %v2259_v61 }
 0x340   : > { %v2267_v6 = vmul.f32 %v2258_v46, %v2258_v46  ;;  %v2269_v21 = vmul.f32 %v2260_v44, %v2260_v44 }
 0x341   : > { %v2271_v28 = vadd.f32 %v2270_v54, %v2263_v25 }
 0x343   : > { %v2272_v40 = vadd.f32 %v2271_v28, %v2264_v35 }
 0x345   : > { %v2273_v5 = vadd.f32 %v2272_v40, %v2265_v2 }
 0x347   : > { %v2274_v55 = vadd.f32 %v2273_v5, %v2266_v43 }
 0x349   : > { %v2275_v23 = vadd.f32 %v2274_v55, %v2267_v6 }
 0x34b   : > { %v2276_v7 = vadd.f32 %v2275_v23, %v2268_v9 }
 0x34d   : > { %v2277_v63 = vadd.f32 %v2276_v7, %v2269_v21 }
 0x34f   : > { %2278 = vadd.xlane.f32.xlu0 %v2277_v63 }
 0x36f   : > { %v1243_v8 = vpop.xlane.xlu0 %1242 }
 0x370   : > { %v1244_v50 = vmul.f32 0.0009765625, %v1243_v8 }
 0x372   : > { %v1245_v4 = vadd.f32 1e-05, %v1244_v50 }
 0x374   : > { %2626 = vrsqrt.f32 %v1245_v4 }
 0x37e   : > { %v2627_v58 = vpop.eup %2626 }
 0x37f   : > { %v1247_v60 = vmul.f32 %v2627_v58, %v3573_v16  ;;  %v1248_v18 = vmul.f32 %v2627_v58, %v3576_v1  ;;  %v1249_v15 = vmul.f32 %v2627_v58, %v3579_v33  ;;  %v1250_v52 = vmul.f32 %v2627_v58, %v3583_v39 }
 0x380   : > { %v1251_v19 = vmul.f32 %v2627_v58, %v3591_v37  ;;  %v1252_v53 = vmul.f32 %v2627_v58, %v3597_v14  ;;  %v1253_v16 = vmul.f32 %v2627_v58, %v3603_v0  ;;  %v1254_v1 = vmul.f32 %v2627_v58, %v3608_v12 }
 0x381   : > { %v1255_v33 = vmul.f32 %v2627_v58, %v1224_v13  ;;  %v1256_v39 = vmax.f32 %v1247_v60, 0.0  ;;  %v1257_v24 = vmax.f32 %v1248_v18, 0.0  ;;  %v1258_v57 = vmax.f32 %v1249_v15, 0.0 }
 0x382   : > { %v1259_v17 = vmax.f32 %v1250_v52, 0.0  ;;  %v1260_v22 = vmax.f32 %v1251_v19, 0.0  ;;  %v1261_v37 = vmax.f32 %v1252_v53, 0.0  ;;  %v1262_v32 = vmax.f32 %v1253_v16, 0.0 }
 0x383   : > { %v1263_v38 = vmax.f32 %v1254_v1, 0.0  ;;  %v1264_v14 = vmax.f32 %v1255_v33, 0.0  ;;  %1265 = vst [vmem:[%s3667_s3] sm:$0xff] %v1256_v39  ;;  %1266 = vst [vmem:[%s3667_s3 + $0x8] sm:$0xff] %v1257_v24 }
 0x384   : > { %1267 = vst [vmem:[%s3667_s3 + $0x10] sm:$0xff] %v1258_v57  ;;  %1268 = vst [vmem:[%s3667_s3 + $0x18] sm:$0xff] %v1259_v17 }
 0x385   : > { %1269 = vst [vmem:[%s3667_s3 + $0x20] sm:$0xff] %v1260_v22  ;;  %1270 = vst [vmem:[%s3667_s3 + $0x28] sm:$0xff] %v1261_v37 }
 0x386   : > { %1271 = vst [vmem:[%s3667_s3 + $0x30] sm:$0xff] %v1262_v32  ;;  %1272 = vst [vmem:[%s3667_s3 + $0x38] sm:$0xff] %v1263_v38 }
 0x387   : > { %1273 = vst [vmem:[%s3667_s3 + $0x40] sm:$0xff] %v1264_v14 }
 0x3dc   : > { %v2279_v0 = vpop.xlane.xlu0 %2278 }
 0x3dd   : > { %v2280_v12 = vmul.f32 0.0009765625, %v2279_v0 }
 0x3df   : > { %v2281_v13 = vadd.f32 1e-05, %v2280_v12 }
 0x3e1   : > { %2628 = vrsqrt.f32 %v2281_v13 }
 0x3eb   : > { %v2629_v34 = vpop.eup %2628 }
 0x3ec   : > { %v2283_v49 = vmul.f32 %v2629_v34, %v3623_v27  ;;  %v2284_v36 = vmul.f32 %v2629_v34, %v3626_v10  ;;  %v2285_v42 = vmul.f32 %v2629_v34, %v3629_v41  ;;  %v2286_v47 = vmul.f32 %v2629_v34, %v3633_v3 }
 0x3ed   : > { %v2287_v48 = vmul.f32 %v2629_v34, %v3641_v20  ;;  %v2288_v29 = vmul.f32 %v2629_v34, %v3647_v11  ;;  %v2289_v30 = vmul.f32 %v2629_v34, %v2258_v46  ;;  %v2290_v51 = vmul.f32 %v2629_v34, %v2259_v61 }
 0x3ee   : > { %v2291_v56 = vmul.f32 %v2629_v34, %v2260_v44  ;;  %v2292_v27 = vmax.f32 %v2283_v49, 0.0  ;;  %v2293_v10 = vmax.f32 %v2284_v36, 0.0  ;;  %v2294_v41 = vmax.f32 %v2285_v42, 0.0 }
 0x3ef   : > { %v2295_v59 = vmax.f32 %v2286_v47, 0.0  ;;  %v2296_v3 = vmax.f32 %v2287_v48, 0.0  ;;  %v2297_v62 = vmax.f32 %v2288_v29, 0.0  ;;  %v2298_v26 = vmax.f32 %v2289_v30, 0.0 }
 0x3f0   : > { %v2299_v20 = vmax.f32 %v2290_v51, 0.0  ;;  %v2300_v25 = vmax.f32 %v2291_v56, 0.0  ;;  %2460 = vst [vmem:[%s3667_s3 + $0x48] sm:$0xff] %v2292_v27  ;;  %2461 = vst [vmem:[%s3667_s3 + $0x50] sm:$0xff] %v2293_v10 }
 0x3f1   : > { %2462 = vst [vmem:[%s3667_s3 + $0x58] sm:$0xff] %v2294_v41  ;;  %2463 = vst [vmem:[%s3667_s3 + $0x60] sm:$0xff] %v2295_v59 }
 0x3f2   : > { %2464 = vst [vmem:[%s3667_s3 + $0x68] sm:$0xff] %v2296_v3  ;;  %2465 = vst [vmem:[%s3667_s3 + $0x70] sm:$0xff] %v2297_v62 }
 0x3f3   : > { %2466 = vst [vmem:[%s3667_s3 + $0x78] sm:$0xff] %v2298_v26  ;;  %2467 = vst [vmem:[%s3667_s3 + $0x80] sm:$0xff] %v2299_v20 }
 0x3f4   : > { %2468 = vst [vmem:[%s3667_s3 + $0x88] sm:$0xff] %v2300_v25 }
 0x3f5 PF: > { %s12_s9 = sadd.s32 1, %s2637_s9  }
 0x3f6   : > { %p9_p4 = scmp.ge.s32.totalorder %s12_s9, 4  }
 0x3f8   :  { %11 = sbr.rel (!%p9_p4) target bundleno = 1 (0x1), region = 60 }

</bundles_post_ra>
